<compile_context>
chip_gen: v5e
topology: v5e:2x2
jax: 0.10.0
libtpu: 0.0.40
codegen_flags: <defaults>
</compile_context>

<pallas_src>
import functools

import jax
import jax.numpy as jnp
import numpy as np
from jax import lax
from jax.experimental import pallas as pl
from jax.experimental.pallas import tpu as pltpu

C_IN = 24      # n_input_channels
C_OUT = 32     # n_output_channels
L_IN = 256     # small test sequence length (module default 64000; same arithmetic)
B = 2
PAD = 128      # per-sample lane width for all post-layer-1 activations (zero padded)
SLOT = 128     # lane stride of one weight slot inside the packed weight constant
NEG = -1e30    # additive mask value for invalid columns in the final global max


def _lengths(L):
    """Static length bookkeeping matching the PyTorch feature extractor."""
    L1 = (L - 2 * 2 - 1) // 3 + 1   # Conv1d(k=3, stride=3, dilation=2)   -> 84
    P1 = L1 // 2                    # MaxPool1d(2, 2)                     -> 42
    L2 = P1 - 2                     # Conv1d(k=3, stride=1)               -> 40
    P2 = L2 // 2                    #                                     -> 20
    L3 = P2 - 2                     #                                     -> 18
    P3 = L3 // 2                    #                                     -> 9
    L4 = P3 - 2                     # final Conv1d                        -> 7
    return L1, P1, L2, P2, L3, P3, L4


def _constants(L, Bx):
    """Block-diagonal (per-sample) 0/1 decimation matrices + final-max additive mask.

    Built host-side so the kernel never constructs masks at runtime.
    """
    _, P1, _, P2, _, P3, L4 = _lengths(L)
    assert L % PAD == 0 and P1 <= PAD, "small-shape script: L must be a multiple of 128"
    # Roll-wraparound safety: the last column ever read inside a sample's lane block
    # must stay inside that block, otherwise a rolled copy would leak data from the
    # next sample (or wrapped tail data) into a selected column.
    assert 6 * (P1 - 1) + 3 + 4 < L          # layer 1: conv taps + pool partner
    assert 2 * (P2 - 1) + 1 + 2 < P1         # layer 2
    assert 2 * (P3 - 1) + 1 + 2 < P2         # layer 3
    assert (L4 - 1) + 2 < P3                 # layer 4 taps stay in valid region

    BL, BP = Bx * L, Bx * PAD
    # Layer 1: stride-3 conv decimation fused with MaxPool(2,2): col b*L+6p -> b*PAD+p.
    s1 = np.zeros((BL, BP), np.float32)
    # Layers 2/3: MaxPool(2,2) even pick: col b*PAD+2p -> b*PAD+p.  Lane-packed pair.
    s23 = np.zeros((BP, 2 * BP), np.float32)
    # Final global-max additive mask: 0 on valid conv-output cols, -1e30 elsewhere.
    mask = np.full((1, BP), NEG, np.float32)
    for b in range(Bx):
        s1[b * L + 6 * np.arange(P1), b * PAD + np.arange(P1)] = 1.0
        s23[b * PAD + 2 * np.arange(P2), b * PAD + np.arange(P2)] = 1.0
        s23[b * PAD + 2 * np.arange(P3), BP + b * PAD + np.arange(P3)] = 1.0
        mask[0, b * PAD:b * PAD + L4] = 0.0
    return jnp.asarray(s1), jnp.asarray(s23), jnp.asarray(mask)


def _fold_conv_weight(w):
    """PyTorch (C_out, C_in, K) -> lane-dense folded (C_out, K*C_in): [tap0|tap1|tap2]."""
    co, ci, k = w.shape
    return jnp.transpose(w, (0, 2, 1)).reshape(co, k * ci)


def _pack_weights(w1, w2, w3, w4, wl):
    """All weights in one lane-dense (32, 5*128) constant, one 128-lane slot each."""
    pack = jnp.zeros((C_OUT, 5 * SLOT), jnp.float32)
    pack = pack.at[:, 0:3 * C_IN].set(_fold_conv_weight(w1).astype(jnp.float32))
    pack = pack.at[:, SLOT:SLOT + 3 * C_OUT].set(_fold_conv_weight(w2).astype(jnp.float32))
    pack = pack.at[:, 2 * SLOT:2 * SLOT + 3 * C_OUT].set(_fold_conv_weight(w3).astype(jnp.float32))
    pack = pack.at[:, 3 * SLOT:3 * SLOT + 3 * C_OUT].set(_fold_conv_weight(w4).astype(jnp.float32))
    pack = pack.at[:, 4 * SLOT:].set(
        jnp.broadcast_to(jnp.transpose(wl).astype(jnp.float32), (C_OUT, SLOT)))
    return pack


def _disc_kernel(x_ref, w_ref, s1_ref, s23_ref, mask_ref, o_ref, *, Bx, L):
    BL = Bx * L
    BP = Bx * PAD
    x = x_ref[...]                                             # (C_IN, B*L), merged batch

    # Static lane-slot slices of the packed weight constant.
    w1 = w_ref[:, 0:3 * C_IN]                                  # (32, 72)
    w2 = w_ref[:, SLOT:SLOT + 3 * C_OUT]                       # (32, 96)
    w3 = w_ref[:, 2 * SLOT:2 * SLOT + 3 * C_OUT]               # (32, 96)
    w4 = w_ref[:, 3 * SLOT:3 * SLOT + 3 * C_OUT]               # (32, 96)
    wl = w_ref[:, 4 * SLOT:5 * SLOT]                           # (32, 128), wl on every lane

    # ---- Conv1d(24->32, k=3, stride=3, dilation=2, bias=False) + Tanh + MaxPool(2,2)
    # Tap shifts via XLU roll; the 3 taps fold into one K=72 matmul over the merged
    # (24, B*L) block.  Wrapped / cross-sample tail columns are never selected
    # downstream (statically asserted in _constants).
    x3 = jnp.concatenate(
        [x, pltpu.roll(x, BL - 2, axis=1), pltpu.roll(x, BL - 4, axis=1)], axis=0)
    c1 = jnp.dot(w1, x3, preferred_element_type=jnp.float32)   # (32, B*L)
    # conv output o sits at column 3o; MaxPool pairs (6p, 6p+3): max with a shift-by-3
    # partner, then ONE fused block-diagonal decimation matmul (col b*L+6p -> b*PAD+p).
    # tanh is monotonic so it is applied after the max / selection.
    m1 = jnp.maximum(c1, pltpu.roll(c1, BL - 3, axis=1))
    h = jnp.tanh(jnp.dot(m1, s1_ref[...], preferred_element_type=jnp.float32))  # (32, B*PAD)

    # ---- Conv1d(32->32, k=3, s=1) + Tanh + MaxPool(2,2), twice (folded taps, K=96).
    def conv_pool(h, w, s):
        h3 = jnp.concatenate(
            [h, pltpu.roll(h, BP - 1, axis=1), pltpu.roll(h, BP - 2, axis=1)], axis=0)
        c = jnp.dot(w, h3, preferred_element_type=jnp.float32)       # (32, B*PAD)
        m = jnp.maximum(c, pltpu.roll(c, BP - 1, axis=1))
        return jnp.tanh(jnp.dot(m, s, preferred_element_type=jnp.float32))

    h = conv_pool(h, w2, s23_ref[:, :BP])      # per-sample valid cols [0, 20), rest 0
    h = conv_pool(h, w3, s23_ref[:, BP:])      # per-sample valid cols [0, 9),  rest 0

    # ---- Final Conv1d(32->32, k=3) + Tanh, AdaptiveMaxPool1d(1), Linear(32,1), Sigmoid.
    h3 = jnp.concatenate(
        [h, pltpu.roll(h, BP - 1, axis=1), pltpu.roll(h, BP - 2, axis=1)], axis=0)
    # Additive -1e30 mask kills invalid / cross-sample columns before the global max.
    c4 = jnp.dot(w4, h3, preferred_element_type=jnp.float32) + mask_ref[...]   # (32, B*PAD)

    probs = []
    for b in range(Bx):                                        # static unroll over samples
        fm = jnp.max(c4[:, b * PAD:(b + 1) * PAD], axis=1, keepdims=True)      # (32, 1)
        # max/tanh commute; Linear(32->1, bias=False) via lane-broadcast weight + sublane
        # reduce -> a (1, 128) all-equal row, kept lane-dense for the output store.
        logit = jnp.sum(wl * jnp.tanh(fm), axis=0, keepdims=True)              # (1, PAD)
        probs.append(jax.nn.sigmoid(logit))
    o_ref[...] = jnp.concatenate(probs, axis=1).astype(o_ref.dtype)            # (1, B*PAD)


def discriminator1d_pallas(x, w1, w2, w3, w4, wl):
    """x: (B, C_IN, L); conv weights in PyTorch layout (C_out, C_in, K); linear (1, C_out)."""
    Bx, C, L = x.shape
    BL, BP = Bx * L, Bx * PAD
    # Host-side batch merge: sample b occupies columns [b*L, (b+1)*L).
    xm = jnp.transpose(x, (1, 0, 2)).reshape(C, BL).astype(jnp.float32)
    wpack = _pack_weights(w1, w2, w3, w4, wl)
    s1, s23, mask = _constants(L, Bx)

    kernel = functools.partial(_disc_kernel, Bx=Bx, L=L)

    out = pl.pallas_call(
        kernel,
        out_shape=jax.ShapeDtypeStruct((1, BP), jnp.float32),
        grid_spec=pltpu.PrefetchScalarGridSpec(
            num_scalar_prefetch=0,
            grid=(1,),                                  # whole batch in one step
            in_specs=[
                pl.BlockSpec((C, BL), lambda i: (0, 0)),
                pl.BlockSpec(wpack.shape, lambda i: (0, 0)),
                pl.BlockSpec(s1.shape, lambda i: (0, 0)),
                pl.BlockSpec(s23.shape, lambda i: (0, 0)),
                pl.BlockSpec(mask.shape, lambda i: (0, 0)),
            ],
            out_specs=pl.BlockSpec((1, BP), lambda i: (0, 0)),
        ),
        compiler_params=pltpu.CompilerParams(dimension_semantics=("arbitrary",)),
    )(xm, wpack, s1, s23, mask)
    # Each 128-lane block of the output row is constant; lane b*PAD holds sample b.
    return out[0, ::PAD].reshape(Bx, 1)                 # (B, 1)


def reference(x, w1, w2, w3, w4, wl):
    """Pure-JAX reference mirroring the PyTorch forward."""
    dn = ("NCH", "OIH", "NCH")

    def mp(h):
        return lax.reduce_window(h, -jnp.inf, lax.max, (1, 1, 2), (1, 1, 2), "VALID")

    h = jnp.tanh(lax.conv_general_dilated(x, w1, (3,), "VALID",
                                          rhs_dilation=(2,), dimension_numbers=dn))
    h = mp(h)
    h = jnp.tanh(lax.conv_general_dilated(h, w2, (1,), "VALID", dimension_numbers=dn))
    h = mp(h)
    h = jnp.tanh(lax.conv_general_dilated(h, w3, (1,), "VALID", dimension_numbers=dn))
    h = mp(h)
    h = jnp.tanh(lax.conv_general_dilated(h, w4, (1,), "VALID", dimension_numbers=dn))
    pooled = jnp.max(h, axis=2)                     # AdaptiveMaxPool1d(1) + flatten
    return jax.nn.sigmoid(pooled @ wl.T)            # Linear(32,1,bias=False) + Sigmoid


if __name__ == "__main__":
    key = jax.random.PRNGKey(0)
    ks = jax.random.split(key, 6)
    x = jax.random.normal(ks[0], (B, C_IN, L_IN), jnp.float32)
    # Deterministic synthetic parameters (PyTorch layouts), bias=False everywhere.
    w1 = 0.1 * jax.random.normal(ks[1], (C_OUT, C_IN, 3), jnp.float32)
    w2 = 0.1 * jax.random.normal(ks[2], (C_OUT, C_OUT, 3), jnp.float32)
    w3 = 0.1 * jax.random.normal(ks[3], (C_OUT, C_OUT, 3), jnp.float32)
    w4 = 0.1 * jax.random.normal(ks[4], (C_OUT, C_OUT, 3), jnp.float32)
    wl = 0.1 * jax.random.normal(ks[5], (1, C_OUT), jnp.float32)
    # TODO(synk): self.aux is defined in __init__ but unused in forward(); not implemented.

    out = jax.block_until_ready(discriminator1d_pallas(x, w1, w2, w3, w4, wl))
    ref = jax.block_until_ready(reference(x, w1, w2, w3, w4, wl))
    np.testing.assert_allclose(np.asarray(out), np.asarray(ref), rtol=2e-3, atol=2e-4)
    print("KERNEL_OK")
</pallas_src>

<mosaic_0001>
module attributes {stable_mosaic.version = 11 : i64} {
  func.func @_disc_kernel(%arg0: i32, %arg1: memref<24x512xf32, #tpu.memory_space<vmem>>, %arg2: memref<32x640xf32, #tpu.memory_space<vmem>>, %arg3: memref<512x256xf32, #tpu.memory_space<vmem>>, %arg4: memref<256x512xf32, #tpu.memory_space<vmem>>, %arg5: memref<1x256xf32, #tpu.memory_space<vmem>>, %arg6: memref<1x256xf32, #tpu.memory_space<vmem>>) attributes {dimension_semantics = [#tpu.dimension_semantics<arbitrary>], iteration_bounds = array<i64: 1>, scalar_prefetch = 0 : i64, scratch_operands = 0 : i64, tpu.core_type = #tpu.core_type<tc>, window_params = [{pipeline_mode = #tpu.pipeline_mode<synchronous>, transform_indices = @transform_0, window_bounds = array<i64: 24, 512>}, {pipeline_mode = #tpu.pipeline_mode<synchronous>, transform_indices = @transform_1, window_bounds = array<i64: 32, 640>}, {pipeline_mode = #tpu.pipeline_mode<synchronous>, transform_indices = @transform_2, window_bounds = array<i64: 512, 256>}, {pipeline_mode = #tpu.pipeline_mode<synchronous>, transform_indices = @transform_3, window_bounds = array<i64: 256, 512>}, {pipeline_mode = #tpu.pipeline_mode<synchronous>, transform_indices = @transform_4, window_bounds = array<i64: 1, 256>}, {pipeline_mode = #tpu.pipeline_mode<synchronous>, transform_indices = @transform_5, window_bounds = array<i64: 1, 256>}]} {
    %c0 = arith.constant 0 : index
    %c0_0 = arith.constant 0 : index
    %0 = vector.load %arg1[%c0, %c0_0] : memref<24x512xf32, #tpu.memory_space<vmem>>, vector<24x512xf32>
    %c0_1 = arith.constant 0 : index
    %c0_2 = arith.constant 0 : index
    %1 = vector.load %arg2[%c0_1, %c0_2] : memref<32x640xf32, #tpu.memory_space<vmem>>, vector<32x72xf32>
    %c0_3 = arith.constant 0 : index
    %c128 = arith.constant 128 : index
    %2 = vector.load %arg2[%c0_3, %c128] : memref<32x640xf32, #tpu.memory_space<vmem>>, vector<32x96xf32>
    %c0_4 = arith.constant 0 : index
    %c256 = arith.constant 256 : index
    %3 = vector.load %arg2[%c0_4, %c256] : memref<32x640xf32, #tpu.memory_space<vmem>>, vector<32x96xf32>
    %c0_5 = arith.constant 0 : index
    %c384 = arith.constant 384 : index
    %4 = vector.load %arg2[%c0_5, %c384] : memref<32x640xf32, #tpu.memory_space<vmem>>, vector<32x96xf32>
    %c0_6 = arith.constant 0 : index
    %c512 = arith.constant 512 : index
    %5 = vector.load %arg2[%c0_6, %c512] : memref<32x640xf32, #tpu.memory_space<vmem>>, vector<32x128xf32>
    %c510_i32 = arith.constant 510 : i32
    %6 = tpu.dynamic_rotate %0 by %c510_i32 dim 1 : vector<24x512xf32>, i32 -> vector<24x512xf32>
    %c508_i32 = arith.constant 508 : i32
    %7 = tpu.dynamic_rotate %0 by %c508_i32 dim 1 : vector<24x512xf32>, i32 -> vector<24x512xf32>
    %8 = tpu.concatenate %0, %6, %7 in 0 : vector<24x512xf32>, vector<24x512xf32>, vector<24x512xf32> -> vector<72x512xf32>
    %cst = arith.constant dense<0.000000e+00> : vector<32x512xf32>
    %9 = tpu.matmul %1, %8, %cst {dimension_numbers = #tpu.dot_dimension_numbers<[1], [0], [0], [1], [0, 0, 1, 1], [], []>} : vector<32x72xf32>, vector<72x512xf32>, vector<32x512xf32> -> vector<32x512xf32>
    %c509_i32 = arith.constant 509 : i32
    %10 = tpu.dynamic_rotate %9 by %c509_i32 dim 1 : vector<32x512xf32>, i32 -> vector<32x512xf32>
    %11 = arith.maximumf %9, %10 : vector<32x512xf32>
    %c0_7 = arith.constant 0 : index
    %c0_8 = arith.constant 0 : index
    %12 = vector.load %arg3[%c0_7, %c0_8] : memref<512x256xf32, #tpu.memory_space<vmem>>, vector<512x256xf32>
    %cst_9 = arith.constant dense<0.000000e+00> : vector<32x256xf32>
    %13 = tpu.matmul %11, %12, %cst_9 {dimension_numbers = #tpu.dot_dimension_numbers<[1], [0], [0], [1], [0, 0, 1, 1], [], []>} : vector<32x512xf32>, vector<512x256xf32>, vector<32x256xf32> -> vector<32x256xf32>
    %14 = math.tanh %13 : vector<32x256xf32>
    %c0_10 = arith.constant 0 : index
    %c0_11 = arith.constant 0 : index
    %15 = vector.load %arg4[%c0_10, %c0_11] : memref<256x512xf32, #tpu.memory_space<vmem>>, vector<256x256xf32>
    %c255_i32 = arith.constant 255 : i32
    %16 = tpu.dynamic_rotate %14 by %c255_i32 dim 1 : vector<32x256xf32>, i32 -> vector<32x256xf32>
    %c254_i32 = arith.constant 254 : i32
    %17 = tpu.dynamic_rotate %14 by %c254_i32 dim 1 : vector<32x256xf32>, i32 -> vector<32x256xf32>
    %18 = tpu.concatenate %14, %16, %17 in 0 : vector<32x256xf32>, vector<32x256xf32>, vector<32x256xf32> -> vector<96x256xf32>
    %cst_12 = arith.constant dense<0.000000e+00> : vector<32x256xf32>
    %19 = tpu.matmul %2, %18, %cst_12 {dimension_numbers = #tpu.dot_dimension_numbers<[1], [0], [0], [1], [0, 0, 1, 1], [], []>} : vector<32x96xf32>, vector<96x256xf32>, vector<32x256xf32> -> vector<32x256xf32>
    %c255_i32_13 = arith.constant 255 : i32
    %20 = tpu.dynamic_rotate %19 by %c255_i32_13 dim 1 : vector<32x256xf32>, i32 -> vector<32x256xf32>
    %21 = arith.maximumf %19, %20 : vector<32x256xf32>
    %cst_14 = arith.constant dense<0.000000e+00> : vector<32x256xf32>
    %22 = tpu.matmul %21, %15, %cst_14 {dimension_numbers = #tpu.dot_dimension_numbers<[1], [0], [0], [1], [0, 0, 1, 1], [], []>} : vector<32x256xf32>, vector<256x256xf32>, vector<32x256xf32> -> vector<32x256xf32>
    %23 = math.tanh %22 : vector<32x256xf32>
    %c0_15 = arith.constant 0 : index
    %c256_16 = arith.constant 256 : index
    %24 = vector.load %arg4[%c0_15, %c256_16] : memref<256x512xf32, #tpu.memory_space<vmem>>, vector<256x256xf32>
    %c255_i32_17 = arith.constant 255 : i32
    %25 = tpu.dynamic_rotate %23 by %c255_i32_17 dim 1 : vector<32x256xf32>, i32 -> vector<32x256xf32>
    %c254_i32_18 = arith.constant 254 : i32
    %26 = tpu.dynamic_rotate %23 by %c254_i32_18 dim 1 : vector<32x256xf32>, i32 -> vector<32x256xf32>
    %27 = tpu.concatenate %23, %25, %26 in 0 : vector<32x256xf32>, vector<32x256xf32>, vector<32x256xf32> -> vector<96x256xf32>
    %cst_19 = arith.constant dense<0.000000e+00> : vector<32x256xf32>
    %28 = tpu.matmul %3, %27, %cst_19 {dimension_numbers = #tpu.dot_dimension_numbers<[1], [0], [0], [1], [0, 0, 1, 1], [], []>} : vector<32x96xf32>, vector<96x256xf32>, vector<32x256xf32> -> vector<32x256xf32>
    %c255_i32_20 = arith.constant 255 : i32
    %29 = tpu.dynamic_rotate %28 by %c255_i32_20 dim 1 : vector<32x256xf32>, i32 -> vector<32x256xf32>
    %30 = arith.maximumf %28, %29 : vector<32x256xf32>
    %cst_21 = arith.constant dense<0.000000e+00> : vector<32x256xf32>
    %31 = tpu.matmul %30, %24, %cst_21 {dimension_numbers = #tpu.dot_dimension_numbers<[1], [0], [0], [1], [0, 0, 1, 1], [], []>} : vector<32x256xf32>, vector<256x256xf32>, vector<32x256xf32> -> vector<32x256xf32>
    %32 = math.tanh %31 : vector<32x256xf32>
    %c255_i32_22 = arith.constant 255 : i32
    %33 = tpu.dynamic_rotate %32 by %c255_i32_22 dim 1 : vector<32x256xf32>, i32 -> vector<32x256xf32>
    %c254_i32_23 = arith.constant 254 : i32
    %34 = tpu.dynamic_rotate %32 by %c254_i32_23 dim 1 : vector<32x256xf32>, i32 -> vector<32x256xf32>
    %35 = tpu.concatenate %32, %33, %34 in 0 : vector<32x256xf32>, vector<32x256xf32>, vector<32x256xf32> -> vector<96x256xf32>
    %cst_24 = arith.constant dense<0.000000e+00> : vector<32x256xf32>
    %36 = tpu.matmul %4, %35, %cst_24 {dimension_numbers = #tpu.dot_dimension_numbers<[1], [0], [0], [1], [0, 0, 1, 1], [], []>} : vector<32x96xf32>, vector<96x256xf32>, vector<32x256xf32> -> vector<32x256xf32>
    %c0_25 = arith.constant 0 : index
    %c0_26 = arith.constant 0 : index
    %37 = vector.load %arg5[%c0_25, %c0_26] : memref<1x256xf32, #tpu.memory_space<vmem>>, vector<1x256xf32>
    %38 = vector.broadcast %37 : vector<1x256xf32> to vector<32x256xf32>
    %39 = arith.addf %36, %38 : vector<32x256xf32>
    %40 = vector.extract_strided_slice %39 {offsets = [0, 0], sizes = [32, 128], strides = [1, 1]} : vector<32x256xf32> to vector<32x128xf32>
    %cst_27 = arith.constant dense<0xFF800000> : vector<32xf32>
    %41 = vector.multi_reduction <maximumf>, %40, %cst_27 [1] : vector<32x128xf32> to vector<32xf32>
    %42 = vector.shape_cast %41 : vector<32xf32> to vector<32x1xf32>
    %43 = math.tanh %42 : vector<32x1xf32>
    %44 = vector.broadcast %43 : vector<32x1xf32> to vector<32x128xf32>
    %45 = arith.mulf %5, %44 : vector<32x128xf32>
    %cst_28 = arith.constant dense<0.000000e+00> : vector<128xf32>
    %46 = vector.multi_reduction <add>, %45, %cst_28 [0] : vector<32x128xf32> to vector<128xf32>
    %47 = vector.shape_cast %46 : vector<128xf32> to vector<1x128xf32>
    %48 = arith.negf %47 : vector<1x128xf32>
    %49 = math.exp %48 : vector<1x128xf32>
    %cst_29 = arith.constant 1.000000e+00 : f32
    %50 = vector.broadcast %cst_29 : f32 to vector<1x128xf32>
    %51 = arith.addf %50, %49 : vector<1x128xf32>
    %52 = arith.divf %50, %51 : vector<1x128xf32>
    %53 = vector.extract_strided_slice %39 {offsets = [0, 128], sizes = [32, 128], strides = [1, 1]} : vector<32x256xf32> to vector<32x128xf32>
    %cst_30 = arith.constant dense<0xFF800000> : vector<32xf32>
    %54 = vector.multi_reduction <maximumf>, %53, %cst_30 [1] : vector<32x128xf32> to vector<32xf32>
    %55 = vector.shape_cast %54 : vector<32xf32> to vector<32x1xf32>
    %56 = math.tanh %55 : vector<32x1xf32>
    %57 = vector.broadcast %56 : vector<32x1xf32> to vector<32x128xf32>
    %58 = arith.mulf %5, %57 : vector<32x128xf32>
    %cst_31 = arith.constant dense<0.000000e+00> : vector<128xf32>
    %59 = vector.multi_reduction <add>, %58, %cst_31 [0] : vector<32x128xf32> to vector<128xf32>
    %60 = vector.shape_cast %59 : vector<128xf32> to vector<1x128xf32>
    %61 = arith.negf %60 : vector<1x128xf32>
    %62 = math.exp %61 : vector<1x128xf32>
    %cst_32 = arith.constant 1.000000e+00 : f32
    %63 = vector.broadcast %cst_32 : f32 to vector<1x128xf32>
    %64 = arith.addf %63, %62 : vector<1x128xf32>
    %65 = arith.divf %63, %64 : vector<1x128xf32>
    %66 = tpu.concatenate %52, %65 in 1 : vector<1x128xf32>, vector<1x128xf32> -> vector<1x256xf32>
    %c0_33 = arith.constant 0 : index
    %c0_34 = arith.constant 0 : index
    %67 = vector.load %arg6[%c0_33, %c0_34] : memref<1x256xf32, #tpu.memory_space<vmem>>, vector<1x256xf32>
    tpu.vector_store %arg6[%c0_33, %c0_34], %66 {strides = array<i32>} : memref<1x256xf32, #tpu.memory_space<vmem>>, vector<1x256xf32>,
    return
  }
  func.func @transform_0(%arg0: i32) -> (i32, i32) {
    %c0_i32 = arith.constant 0 : i32
    %c0_i32_0 = arith.constant 0 : i32
    %c0_i32_1 = arith.constant 0 : i32
    return %c0_i32, %c0_i32_0 : i32, i32
  }
  func.func @transform_1(%arg0: i32) -> (i32, i32) {
    %c0_i32 = arith.constant 0 : i32
    %c0_i32_0 = arith.constant 0 : i32
    %c0_i32_1 = arith.constant 0 : i32
    return %c0_i32, %c0_i32_0 : i32, i32
  }
  func.func @transform_2(%arg0: i32) -> (i32, i32) {
    %c0_i32 = arith.constant 0 : i32
    %c0_i32_0 = arith.constant 0 : i32
    %c0_i32_1 = arith.constant 0 : i32
    return %c0_i32, %c0_i32_0 : i32, i32
  }
  func.func @transform_3(%arg0: i32) -> (i32, i32) {
    %c0_i32 = arith.constant 0 : i32
    %c0_i32_0 = arith.constant 0 : i32
    %c0_i32_1 = arith.constant 0 : i32
    return %c0_i32, %c0_i32_0 : i32, i32
  }
  func.func @transform_4(%arg0: i32) -> (i32, i32) {
    %c0_i32 = arith.constant 0 : i32
    %c0_i32_0 = arith.constant 0 : i32
    %c0_i32_1 = arith.constant 0 : i32
    return %c0_i32, %c0_i32_0 : i32, i32
  }
  func.func @transform_5(%arg0: i32) -> (i32, i32) {
    %c0_i32 = arith.constant 0 : i32
    %c0_i32_0 = arith.constant 0 : i32
    %c0_i32_1 = arith.constant 0 : i32
    return %c0_i32, %c0_i32_0 : i32, i32
  }
}

</mosaic_0001>

<bundles_post_ra>
// kernel: tpu_custom_call.1
= control target key start
LH: loop header
LB: loop body
LE: loop exit
PB: predicated region body
PF: predicated region fallthrough
CT: control target
= control target key end

     0   :  { %10 = vsyncpa [#allocation3], 0  ;;  %s2887_s0 = inlined_call_operand.hbm [shape: f32[24,512], index: 0, kind: input, shape index: {}]   ;;  %s2888_s1 = inlined_call_operand.hbm [shape: f32[32,640], index: 1, kind: input, shape index: {}]   ;;  %s2889_s2 = inlined_call_operand.hbm [shape: f32[512,256], index: 2, kind: input, shape index: {}]   ;;  %s2890_s3 = inlined_call_operand.hbm [shape: f32[256,512], index: 3, kind: input, shape index: {}]   ;;  %s2891_s4 = inlined_call_operand.vmem [shape: f32[1,256], index: 4, kind: input, shape index: {}]   ;;  %s2892_s5 = inlined_call_operand.hbm [shape: f32[1,256], index: 5, kind: output, shape index: {}]  }
   0x1   :  { %11 = vsyncpa [#allocation6], 0 }
   0x2   :  { %12 = vsyncpa [#allocation9], 0  ;;  %s31_s20 = sshll.u32 %s2888_s1, 4  ;;  %s32_s20 = int_to_ptr.hbm [resolvable:$true] %s31_s20 }
   0x3   :  { %13 = vsyncpa [#allocation4], 0  ;;  %s2215_s21 = smov [#allocation5]   ;;  %s18_s25 = sshll.u32 %s2887_s0, 4  ;;  %s19_s25 = int_to_ptr.hbm [resolvable:$true] %s18_s25 }
   0x4   :  { %s33_s22 = sshll.u32 %s2215_s21, 4  ;;  %s2216_s26 = smov 640   ;;  %s34_s22 = int_to_ptr.vmem [resolvable:$true] %s33_s22 }
   0x5   :  { %s2217_s27 = smov 40   ;;  %s2218_s28 = smov [#allocation2]  }
   0x6   :  { %39 = dma.hbm_to_vmem [thread:$0]  %s32_s20, 2560, %s34_s22, [#allocation6], %s2216_s26, %s2216_s26, %s2217_s27  }
   0x7   :  { %s20_s29 = sshll.u32 %s2218_s28, 4  ;;  %s2219_s30 = smov 512   ;;  %s21_s29 = int_to_ptr.vmem [resolvable:$true] %s20_s29 }
   0x8   :  { %s2220_s6 = smov 32   ;;  %s44_s8 = sshll.u32 %s2889_s2, 4  ;;  %s45_s8 = int_to_ptr.hbm [resolvable:$true] %s44_s8 }
   0x9   :  { %26 = dma.hbm_to_vmem [thread:$0]  %s19_s25, 1536, %s21_s29, [#allocation3], %s2219_s30, %s2219_s30, %s2220_s6  }
   0xa   :  { %s2221_s9 = smov [#allocation7]   ;;  %s57_s12 = sshll.u32 %s2890_s3, 4  ;;  %s58_s12 = int_to_ptr.hbm [resolvable:$true] %s57_s12 }
   0xb   :  { %s46_s10 = sshll.u32 %s2221_s9, 4  ;;  %s2222_s13 = smov 256   ;;  %s47_s10 = int_to_ptr.vmem [resolvable:$true] %s46_s10 }
   0xc   :  { %s2223_s14 = smov 16   ;;  %s2224_s15 = smov [#allocation8]  }
   0xd   :  { %52 = dma.hbm_to_vmem [thread:$0]  %s45_s8, 16384, %s47_s10, [#allocation6], %s2222_s13, %s2222_s13, %s2223_s14  }
   0xe   :  { %s59_s16 = sshll.u32 %s2224_s15, 4  ;;  %s60_s16 = int_to_ptr.vmem [resolvable:$true] %s59_s16 }
   0xf   :  { %65 = dma.hbm_to_vmem [thread:$0]  %s58_s12, 16384, %s60_s16, [#allocation9], %s2219_s30, %s2219_s30, %s2220_s6  }
  0x10   :  { %2207 = dma.done.wait [#allocation3], 1536  }
  0x11   :  { %2208 = vsyncadd [#allocation3], 4294965760 }
  0x12   :  { %2209 = dma.done.wait [#allocation6], 18944  }
  0x13   :  { %2210 = vsyncadd [#allocation6], 4294948352 }
  0x14   :  { %2211 = dma.done.wait [#allocation9], 16384  }
  0x15   :  { %2212 = vsyncadd [#allocation9], 4294950912  ;;  %v2272_v0 = vld [vmem:[#allocation2 + $0x40] sm:$0xff]  ;;  %v2274_v1 = vld [vmem:[#allocation2 + $0x50] sm:$0xff]  ;;  %s2225_s2 = smov 124   ;;  %s2226_s3 = smov 126   ;;  %v140_v18 = vlaneseq }
  0x16   :  { %v2276_v2 = vld [vmem:[#allocation2 + $0x30] sm:$0xff]  ;;  %v1755_v3 = vpack.i.bf16 %v2274_v1, %v2272_v0  ;;  %v2280_v4 = vld [vmem:[#allocation2 + $0x38] sm:$0xff]  ;;  %v2286_v7 = vld [vmem:[#allocation2 + $0x48] sm:$0xff]  ;;  %vm192_vm2 = vcmask 588800   ;;  %s2227_s17 = smov 125   ;;  %s2228_s18 = smov 127  }
  0x17   :  { %v1765_v5 = vpack.i.bf16 %v2280_v4, %v2276_v2  ;;  %v2284_v6 = vld [vmem:[#allocation2 + $0x18] sm:$0xff]  ;;  %v2288_v8 = vld [vmem:[#allocation2 + $0x20] sm:$0xff]  ;;  %v2296_v12 = vld [vmem:[#allocation2 + $0x10] sm:$0xff]  ;;  %v2315_v19 = vand.u32 127, %v140_v18  ;;  %vm867_vm5 = vcmask 785408   ;;  %s1662_s24 = sshll.u32 %s2892_s5, 4  ;;  %s1663_s24 = int_to_ptr.hbm [resolvable:$true] %s1662_s24 }
  0x18   :  { %1756 = vrot.lane.b32.xlu0 %v1755_v3, %s2225_s2  ;;  %v2290_v9 = vld [vmem:[#allocation2 + $0x58] sm:$0xff]  ;;  %v1775_v10 = vpack.i.bf16 %v2286_v7, %v2284_v6  ;;  %v2294_v11 = vld [vmem:[#allocation2] sm:$0xff]  ;;  %v2305_v15 = vld [vmem:[#allocation2 + $0x8] sm:$0xff]  ;;  %vm1647_vm13 = vcmask 1040384   ;;  %vm1652_vm15 = vcmp.lt.s32.totalorder %v140_v18, 256 }
  0x19   :  { %1766 = vrot.lane.b32.xlu1 %v1765_v5, %s2225_s2  ;;  %v1760_v13 = vpack.i.bf16 %v2288_v8, %v2290_v9  ;;  %v1770_v14 = vpack.i.bf16 %v2296_v12, %v2294_v11  ;;  %v2307_v16 = vld [vmem:[#allocation2 + $0x28] sm:$0xff]  ;;  %vm179_vm0 = vcmp.lt.s32.totalorder %v2315_v19, 124  ;;  %vm142_vm1 = vcmp.lt.s32.totalorder %v2315_v19, 126 }
  0x1a   :  { %1776 = vrot.lane.b32.xlu2 %v1775_v10, %s2225_s2  ;;  %v1805_v17 = vpack.i.bf16 %v2305_v15, %v2307_v16  ;;  %vm353_vm3 = vcmp.lt.s32.totalorder %v2315_v19, 125  ;;  %vm834_vm4 = vcmp.lt.s32.totalorder %v2315_v19, 127  ;;  %v108_v19 = vld [vmem:[#allocation5 + $0x18] sm:$0xff] }
  0x20   :  { %1761 = vrot.lane.b32.xlu0 %v1760_v13, %s2225_s2 }
  0x21   :  { %1771 = vrot.lane.b32.xlu1 %v1770_v14, %s2225_s2 }
  0x22   :  { %1781 = vrot.lane.b32.xlu2 %v1755_v3, %s2226_s3 }
  0x28   :  { %1786 = vrot.lane.b32.xlu0 %v1760_v13, %s2226_s3 }
  0x29   :  { %1791 = vrot.lane.b32.xlu1 %v1765_v5, %s2226_s3 }
  0x2a   :  { %1796 = vrot.lane.b32.xlu2 %v1770_v14, %s2226_s3 }
  0x30   :  { %1801 = vrot.lane.b32.xlu0 %v1775_v10, %s2226_s3 }
  0x31   :  { %1806 = vrot.lane.b32.xlu1 %v1805_v17, %s2225_s2 }
  0x32   :  { %1811 = vrot.lane.b32.xlu2 %v1805_v17, %s2226_s3 }
  0x74   :  { %v1777_v20 = vpop.permute.xlu2 %1776 }
  0x75   :  { %v1779_v21 = vunpack.i.h.bf16 %v1777_v20  ;;  %v1778_v39 = vunpack.i.l.bf16 %v1777_v20 }
  0x7c   :  { %v2322_v28 = vpop.permute.xlu2 %1781 }
  0x7d   :  { %v1784_v45 = vunpack.i.h.bf16 %v2322_v28  ;;  %v1783_v46 = vunpack.i.l.bf16 %v2322_v28  ;;  %v446_v28 = vld [vmem:[#allocation7 + $0x1e0] sm:$0xff] }
  0x84   :  { %v1797_v47 = vpop.permute.xlu2 %1796 }
  0x85   :  { %v1799_v58 = vunpack.i.h.bf16 %v1797_v47  ;;  %v1798_v59 = vunpack.i.l.bf16 %v1797_v47 }
  0x8a   :  { %v1757_v22 = vpop.permute.xlu0 %1756 }
  0x8b   :  { %v1759_v23 = vunpack.i.h.bf16 %v1757_v22  ;;  %v1758_v24 = vunpack.i.l.bf16 %v1757_v22  ;;  %v1767_v25 = vpop.permute.xlu1 %1766 }
  0x8c   :  { %v1769_v30 = vunpack.i.h.bf16 %v1767_v25  ;;  %v1768_v31 = vunpack.i.l.bf16 %v1767_v25  ;;  %v1812_v3 = vpop.permute.xlu2 %1811 }
  0x8d   :  { %v188_v26 = vsel %vm179_vm0, %v1758_v24, %v1779_v21  ;;  %v185_v27 = vsel %vm179_vm0, %v1779_v21, %v1759_v23  ;;  %v1813_v20 = vunpack.i.l.bf16 %v1812_v3 }
  0x8e   :  { %212 = vmatpush.msra.mxu0 %v188_v26  ;;  %241 = vmatpush.msra.mxu1 %v185_v27  ;;  %v181_v40 = vsel %vm179_vm0, %v1768_v31, %v1769_v30  ;;  %v96_v26 = vld [vmem:[#allocation5] sm:$0xff] }
  0x8f   :  { %v414_v27 = vld [vmem:[#allocation7 + $0xe0] sm:$0xff] }
  0x92   :  { %v1762_v29 = vpop.permute.xlu0 %1761 }
  0x93   :  { %v1764_v32 = vunpack.i.h.bf16 %v1762_v29  ;;  %v1763_v33 = vunpack.i.l.bf16 %v1762_v29  ;;  %v1772_v34 = vpop.permute.xlu1 %1771  ;;  %v476_v29 = vld [vmem:[#allocation7 + $0x2d0] sm:$0xff] }
  0x94   :  { %v1774_v35 = vunpack.i.h.bf16 %v1772_v34  ;;  %v1773_v36 = vunpack.i.l.bf16 %v1772_v34  ;;  %v444_v34 = vld [vmem:[#allocation7 + $0x1d0] sm:$0xff] }
  0x95   :  { %v182_v37 = vsel %vm179_vm0, %v1759_v23, %v1763_v33  ;;  %v191_v38 = vsel %vm179_vm0, %v1763_v33, %v1758_v24  ;;  %v190_v41 = vsel %vm179_vm0, %v1769_v30, %v1764_v32  ;;  %v1814_v23 = vunpack.i.h.bf16 %v1812_v3  ;;  %v510_v30 = vld [vmem:[#allocation7 + $0x3e0] sm:$0xff]  ;;  %v412_v33 = vld [vmem:[#allocation7 + $0xd0] sm:$0xff] }
  0x96   :  { %270 = vmatpush.msra.mxu2 %v182_v37  ;;  %299 = vmatpush.msra.mxu3 %v191_v38  ;;  %v180_v42 = vsel %vm179_vm0, %v1774_v35, %v1778_v39  ;;  %v189_v43 = vsel %vm179_vm0, %v1778_v39, %v1773_v36  ;;  %v508_v37 = vld [vmem:[#allocation7 + $0x3d0] sm:$0xff] }
  0x97   :  { %v440_v3 = vld [vmem:[#allocation7 + $0x1b0] sm:$0xff] }
  0x98   :  { %271 = vmatpush.msra.mxu2 %v181_v40  ;;  %300 = vmatpush.msra.mxu3 %v190_v41  ;;  %v410_v40 = vld [vmem:[#allocation7 + $0xc0] sm:$0xff] }
  0x9a   :  { %v1787_v44 = vpop.permute.xlu0 %1786  ;;  %272 = vmatpush.msra.mxu2 %v180_v42  ;;  %301 = vmatpush.msra.mxu3 %v189_v43  ;;  %v442_v42 = vld [vmem:[#allocation7 + $0x1c0] sm:$0xff]  ;;  %v472_v43 = vld [vmem:[#allocation7 + $0x2b0] sm:$0xff] }
  0x9b   :  { %v1789_v48 = vunpack.i.h.bf16 %v1787_v44  ;;  %v1788_v49 = vunpack.i.l.bf16 %v1787_v44  ;;  %v1792_v50 = vpop.permute.xlu1 %1791  ;;  %v506_v44 = vld [vmem:[#allocation7 + $0x3c0] sm:$0xff] }
  0x9c   :  { %v1794_v51 = vunpack.i.h.bf16 %v1792_v50  ;;  %v1793_v52 = vunpack.i.l.bf16 %v1792_v50 }
  0x9d   :  { %v145_v53 = vsel %vm142_vm1, %v1784_v45, %v1788_v49  ;;  %v154_v54 = vsel %vm142_vm1, %v1788_v49, %v1783_v46 }
  0x9e   :  { %273 = vmatpush.msra.mxu2 %v145_v53  ;;  %302 = vmatpush.msra.mxu3 %v154_v54  ;;  %v144_v55 = vsel %vm142_vm1, %v1793_v52, %v1794_v51  ;;  %v153_v56 = vsel %vm142_vm1, %v1794_v51, %v1789_v48 }
  0xa0   :  { %274 = vmatpush.msra.mxu2 %v144_v55  ;;  %303 = vmatpush.msra.mxu3 %v153_v56 }
  0xa2   :  { %v1802_v57 = vpop.permute.xlu0 %1801 }
  0xa3   :  { %v1803_v60 = vunpack.i.l.bf16 %v1802_v57  ;;  %v1807_v61 = vpop.permute.xlu1 %1806  ;;  %v1804_v13 = vunpack.i.h.bf16 %v1802_v57 }
  0xa4   :  { %v1809_v62 = vunpack.i.h.bf16 %v1807_v61  ;;  %v1808_v63 = vunpack.i.l.bf16 %v1807_v61 }
  0xa5   :  { %v143_v5 = vsel %vm142_vm1, %v1799_v58, %v1803_v60  ;;  %v152_v10 = vsel %vm142_vm1, %v1803_v60, %v1798_v59  ;;  %v151_v24 = vsel %vm142_vm1, %v1783_v46, %v1804_v13  ;;  %v148_v25 = vsel %vm142_vm1, %v1804_v13, %v1784_v45  ;;  %v406_v13 = vld [vmem:[#allocation7 + $0xa0] sm:$0xff] }
  0xa6   :  { %v187_v14 = vsel %vm179_vm0, %v1764_v32, %v1808_v63  ;;  %v184_v17 = vsel %vm179_vm0, %v1808_v63, %v1768_v31  ;;  %275 = vmatpush.msra.mxu2 %v143_v5  ;;  %304 = vmatpush.msra.mxu3 %v152_v10  ;;  %v186_v21 = vsel %vm179_vm0, %v1773_v36, %v1809_v62  ;;  %v474_v36 = vld [vmem:[#allocation7 + $0x2c0] sm:$0xff]  ;;  %v408_v63 = vld [vmem:[#allocation7 + $0xb0] sm:$0xff] }
  0xa7   :  { %213 = vmatpush.msra.mxu0 %v187_v14  ;;  %242 = vmatpush.msra.mxu1 %v184_v17  ;;  %v183_v22 = vsel %vm179_vm0, %v1809_v62, %v1774_v35  ;;  %v470_v5 = vld [vmem:[#allocation7 + $0x2a0] sm:$0xff]  ;;  %v504_v10 = vld [vmem:[#allocation7 + $0x3b0] sm:$0xff] }
  0xa8   :  { %276 = vmatpush.msra.mxu2 %v2274_v1  ;;  %305 = vmatpush.msra.mxu3 %v2290_v9  ;;  %v150_v1 = vsel %vm142_vm1, %v1789_v48, %v1813_v20  ;;  %v147_v9 = vsel %vm142_vm1, %v1813_v20, %v1793_v52  ;;  %v438_v14 = vld [vmem:[#allocation7 + $0x1a0] sm:$0xff]  ;;  %v468_v17 = vld [vmem:[#allocation7 + $0x290] sm:$0xff] }
  0xa9   :  { %214 = vmatpush.msra.mxu0 %v186_v21  ;;  %243 = vmatpush.msra.mxu1 %v183_v22  ;;  %v502_v20 = vld [vmem:[#allocation7 + $0x3a0] sm:$0xff]  ;;  %v404_v21 = vld [vmem:[#allocation7 + $0x90] sm:$0xff] }
  0xaa   :  { %277 = vmatpush.msra.mxu2 %v2276_v2  ;;  %306 = vmatpush.msra.mxu3 %v2280_v4  ;;  %v149_v2 = vsel %vm142_vm1, %v1798_v59, %v1814_v23  ;;  %v146_v4 = vsel %vm142_vm1, %v1814_v23, %v1799_v58  ;;  %v436_v22 = vld [vmem:[#allocation7 + $0x190] sm:$0xff]  ;;  %v466_v23 = vld [vmem:[#allocation7 + $0x280] sm:$0xff] }
  0xab   :  { %215 = vmatpush.msra.mxu0 %v151_v24  ;;  %244 = vmatpush.msra.mxu1 %v148_v25  ;;  %v500_v24 = vld [vmem:[#allocation7 + $0x390] sm:$0xff]  ;;  %v402_v25 = vld [vmem:[#allocation7 + $0x80] sm:$0xff] }
  0xac   :  { %278 = vmatpush.msra.mxu2 %v2296_v12  ;;  %307 = vmatpush.msra.mxu3 %v2284_v6  ;;  %v97_v6 = vld [vmem:[#allocation5 + $0x28] sm:$0xff]  ;;  %v448_v12 = vld [vmem:[#allocation7 + $0x1f0] sm:$0xff] }
  0xad   :  { %216 = vmatpush.msra.mxu0 %v150_v1  ;;  %245 = vmatpush.msra.mxu1 %v147_v9  ;;  %v464_v1 = vld [vmem:[#allocation7 + $0x270] sm:$0xff]  ;;  %v498_v9 = vld [vmem:[#allocation7 + $0x380] sm:$0xff] }
  0xae   :  { %1682 = vmatmul.msk.f32.vlgmr.msra.gmra.mxu2 %vm192_vm2, %v96_v26  ;;  %1686 = vmatmul.msk.f32.vlgmr.msra.gmra.mxu3 %vm192_vm2, %v96_v26 }
  0xaf   :  { %217 = vmatpush.msra.mxu0 %v149_v2  ;;  %246 = vmatpush.msra.mxu1 %v146_v4  ;;  %v400_v2 = vld [vmem:[#allocation7 + $0x70] sm:$0xff] }
  0xb0   :  { %v432_v4 = vld [vmem:[#allocation7 + $0x170] sm:$0xff] }
  0xb1   :  { %218 = vmatpush.msra.mxu0 %v2272_v0  ;;  %247 = vmatpush.msra.mxu1 %v2286_v7  ;;  %v98_v0 = vld [vmem:[#allocation5 + $0x50] sm:$0xff]  ;;  %v99_v7 = vld [vmem:[#allocation5 + $0x78] sm:$0xff] }
  0xb3   :  { %219 = vmatpush.msra.mxu0 %v2288_v8  ;;  %248 = vmatpush.msra.mxu1 %v2307_v16  ;;  %v480_v8 = vld [vmem:[#allocation7 + $0x2f0] sm:$0xff] }
  0xb4   :  { %572 = vmatpush.msrb.mxu2 %v480_v8  ;;  %v512_v16 = vld [vmem:[#allocation7 + $0x3f0] sm:$0xff]  ;;  %v430_v8 = vld [vmem:[#allocation7 + $0x160] sm:$0xff] }
  0xb5   :  { %220 = vmatpush.msra.mxu0 %v2294_v11  ;;  %249 = vmatpush.msra.mxu1 %v2305_v15  ;;  %v416_v11 = vld [vmem:[#allocation7 + $0xf0] sm:$0xff]  ;;  %v478_v15 = vld [vmem:[#allocation7 + $0x2e0] sm:$0xff] }
  0xb6   :  { %1674 = vmatmul.msk.f32.vlgmr.msra.gmra.mxu0 %vm192_vm2, %v96_v26  ;;  %1678 = vmatmul.msk.f32.vlgmr.msra.gmra.mxu1 %vm192_vm2, %v96_v26  ;;  %v434_v26 = vld [vmem:[#allocation7 + $0x180] sm:$0xff] }
  0xb7   :  { %1683 = vmatmul.msk.f32.gmra.mxu2 %vm192_vm2, %v97_v6  ;;  %1687 = vmatmul.msk.f32.gmra.mxu3 %vm192_vm2, %v97_v6 }
  0xb8   :  { %514 = vmatpush.msrb.mxu0 %v416_v11  ;;  %543 = vmatpush.msrb.mxu1 %v448_v12  ;;  %v460_v11 = vld [vmem:[#allocation7 + $0x250] sm:$0xff]  ;;  %v494_v12 = vld [vmem:[#allocation7 + $0x360] sm:$0xff] }
  0xb9   :  { %601 = vmatpush.msrb.mxu3 %v512_v16  ;;  %573 = vmatpush.msrb.mxu2 %v478_v15  ;;  %v396_v15 = vld [vmem:[#allocation7 + $0x50] sm:$0xff] }
  0xba   :  { %515 = vmatpush.msrb.mxu0 %v414_v27  ;;  %544 = vmatpush.msrb.mxu1 %v446_v28  ;;  %v428_v16 = vld [vmem:[#allocation7 + $0x150] sm:$0xff]  ;;  %v458_v27 = vld [vmem:[#allocation7 + $0x240] sm:$0xff] }
  0xbb   :  { %602 = vmatpush.msrb.mxu3 %v510_v30  ;;  %574 = vmatpush.msrb.mxu2 %v476_v29  ;;  %v492_v28 = vld [vmem:[#allocation7 + $0x350] sm:$0xff]  ;;  %v394_v29 = vld [vmem:[#allocation7 + $0x40] sm:$0xff] }
  0xbc   :  { %516 = vmatpush.msrb.mxu0 %v412_v33  ;;  %545 = vmatpush.msrb.mxu1 %v444_v34  ;;  %v426_v30 = vld [vmem:[#allocation7 + $0x140] sm:$0xff]  ;;  %v456_v33 = vld [vmem:[#allocation7 + $0x230] sm:$0xff] }
  0xbd   :  { %575 = vmatpush.msrb.mxu2 %v474_v36  ;;  %603 = vmatpush.msrb.mxu3 %v508_v37  ;;  %v490_v34 = vld [vmem:[#allocation7 + $0x340] sm:$0xff]  ;;  %v424_v36 = vld [vmem:[#allocation7 + $0x130] sm:$0xff] }
  0xbe   :  { %1675 = vmatmul.msk.f32.gmra.mxu0 %vm192_vm2, %v97_v6  ;;  %1679 = vmatmul.msk.f32.gmra.mxu1 %vm192_vm2, %v97_v6  ;;  %v462_v6 = vld [vmem:[#allocation7 + $0x260] sm:$0xff] }
  0xbf   :  { %1684 = vmatmul.msk.f32.gmra.mxu2 %vm192_vm2, %v98_v0  ;;  %1688 = vmatmul.msk.f32.gmra.mxu3 %vm192_vm2, %v98_v0  ;;  %v454_v37 = vld [vmem:[#allocation7 + $0x220] sm:$0xff] }
  0xc0   :  { %517 = vmatpush.msrb.mxu0 %v410_v40  ;;  %546 = vmatpush.msrb.mxu1 %v442_v42  ;;  %v488_v40 = vld [vmem:[#allocation7 + $0x330] sm:$0xff]  ;;  %v422_v42 = vld [vmem:[#allocation7 + $0x120] sm:$0xff] }
  0xc1   :  { %576 = vmatpush.msrb.mxu2 %v472_v43  ;;  %604 = vmatpush.msrb.mxu3 %v506_v44  ;;  %v452_v43 = vld [vmem:[#allocation7 + $0x210] sm:$0xff]  ;;  %v486_v44 = vld [vmem:[#allocation7 + $0x320] sm:$0xff] }
  0xc2   :  { %518 = vmatpush.msrb.mxu0 %v408_v63  ;;  %547 = vmatpush.msrb.mxu1 %v440_v3  ;;  %v482_v63 = vld [vmem:[#allocation7 + $0x300] sm:$0xff]  ;;  %v481_v3 = vld [vmem:[#allocation7 + $0x2f8] sm:$0xff] }
  0xc3   :  { %577 = vmatpush.msrb.mxu2 %v470_v5  ;;  %605 = vmatpush.msrb.mxu3 %v504_v10  ;;  %v417_v5 = vld [vmem:[#allocation7 + $0xf8] sm:$0xff] }
  0xc4   :  { %519 = vmatpush.msrb.mxu0 %v406_v13  ;;  %548 = vmatpush.msrb.mxu1 %v438_v14  ;;  %v449_v10 = vld [vmem:[#allocation7 + $0x1f8] sm:$0xff]  ;;  %v479_v13 = vld [vmem:[#allocation7 + $0x2e8] sm:$0xff] }
  0xc5   :  { %578 = vmatpush.msrb.mxu2 %v468_v17  ;;  %606 = vmatpush.msrb.mxu3 %v502_v20  ;;  %v513_v14 = vld [vmem:[#allocation7 + $0x3f8] sm:$0xff]  ;;  %v415_v17 = vld [vmem:[#allocation7 + $0xe8] sm:$0xff] }
  0xc6   :  { %1676 = vmatmul.msk.f32.gmra.mxu0 %vm192_vm2, %v98_v0  ;;  %1680 = vmatmul.msk.f32.gmra.mxu1 %vm192_vm2, %v98_v0  ;;  %v496_v0 = vld [vmem:[#allocation7 + $0x370] sm:$0xff]  ;;  %v447_v20 = vld [vmem:[#allocation7 + $0x1e8] sm:$0xff] }
  0xc7   :  { %1685 = vmatmul.msk.f32.gmra.mxu2 %vm192_vm2, %v99_v7  ;;  %1689 = vmatmul.msk.f32.gmra.mxu3 %vm192_vm2, %v99_v7 }
  0xc8   :  { %520 = vmatpush.msrb.mxu0 %v404_v21  ;;  %549 = vmatpush.msrb.mxu1 %v436_v22  ;;  %v477_v21 = vld [vmem:[#allocation7 + $0x2d8] sm:$0xff]  ;;  %v511_v22 = vld [vmem:[#allocation7 + $0x3e8] sm:$0xff] }
  0xc9   :  { %579 = vmatpush.msrb.mxu2 %v466_v23  ;;  %607 = vmatpush.msrb.mxu3 %v500_v24  ;;  %v413_v23 = vld [vmem:[#allocation7 + $0xd8] sm:$0xff] }
  0xca   :  { %521 = vmatpush.msrb.mxu0 %v402_v25  ;;  %550 = vmatpush.msrb.mxu1 %v434_v26  ;;  %v445_v24 = vld [vmem:[#allocation7 + $0x1d8] sm:$0xff]  ;;  %v475_v25 = vld [vmem:[#allocation7 + $0x2c8] sm:$0xff] }
  0xcb   :  { %580 = vmatpush.msrb.mxu2 %v464_v1  ;;  %608 = vmatpush.msrb.mxu3 %v498_v9  ;;  %v509_v26 = vld [vmem:[#allocation7 + $0x3d8] sm:$0xff]  ;;  %v411_v1 = vld [vmem:[#allocation7 + $0xc8] sm:$0xff] }
  0xcc   :  { %522 = vmatpush.msrb.mxu0 %v400_v2  ;;  %551 = vmatpush.msrb.mxu1 %v432_v4  ;;  %v443_v9 = vld [vmem:[#allocation7 + $0x1c8] sm:$0xff]  ;;  %v473_v2 = vld [vmem:[#allocation7 + $0x2b8] sm:$0xff] }
  0xcd   :  { %581 = vmatpush.msrb.mxu2 %v462_v6  ;;  %609 = vmatpush.msrb.mxu3 %v496_v0  ;;  %v507_v4 = vld [vmem:[#allocation7 + $0x3c8] sm:$0xff]  ;;  %v409_v6 = vld [vmem:[#allocation7 + $0xb8] sm:$0xff] }
  0xce   :  { %1677 = vmatmul.msk.f32.gmra.mxu0 %vm192_vm2, %v99_v7  ;;  %1681 = vmatmul.msk.f32.gmra.mxu1 %vm192_vm2, %v99_v7  ;;  %v398_v7 = vld [vmem:[#allocation7 + $0x60] sm:$0xff]  ;;  %v441_v0 = vld [vmem:[#allocation7 + $0x1b8] sm:$0xff] }
  0xcf   :  { %523 = vmatpush.msrb.mxu0 %v398_v7  ;;  %552 = vmatpush.msrb.mxu1 %v430_v8  ;;  %v471_v7 = vld [vmem:[#allocation7 + $0x2a8] sm:$0xff]  ;;  %v505_v8 = vld [vmem:[#allocation7 + $0x3b8] sm:$0xff] }
  0xd0   :  { %582 = vmatpush.msrb.mxu2 %v460_v11  ;;  %610 = vmatpush.msrb.mxu3 %v494_v12  ;;  %v407_v11 = vld [vmem:[#allocation7 + $0xa8] sm:$0xff] }
  0xd1   :  { %524 = vmatpush.msrb.mxu0 %v396_v15  ;;  %553 = vmatpush.msrb.mxu1 %v428_v16  ;;  %v439_v12 = vld [vmem:[#allocation7 + $0x1a8] sm:$0xff]  ;;  %v469_v15 = vld [vmem:[#allocation7 + $0x298] sm:$0xff] }
  0xd2   :  { %583 = vmatpush.msrb.mxu2 %v458_v27  ;;  %611 = vmatpush.msrb.mxu3 %v492_v28  ;;  %v503_v16 = vld [vmem:[#allocation7 + $0x3a8] sm:$0xff]  ;;  %v405_v27 = vld [vmem:[#allocation7 + $0x98] sm:$0xff] }
  0xd3   :  { %525 = vmatpush.msrb.mxu0 %v394_v29  ;;  %554 = vmatpush.msrb.mxu1 %v426_v30  ;;  %v437_v28 = vld [vmem:[#allocation7 + $0x198] sm:$0xff]  ;;  %v467_v29 = vld [vmem:[#allocation7 + $0x288] sm:$0xff] }
  0xd4   :  { %584 = vmatpush.msrb.mxu2 %v456_v33  ;;  %612 = vmatpush.msrb.mxu3 %v490_v34  ;;  %v501_v30 = vld [vmem:[#allocation7 + $0x398] sm:$0xff]  ;;  %v403_v33 = vld [vmem:[#allocation7 + $0x88] sm:$0xff] }
  0xd5   :  { %555 = vmatpush.msrb.mxu1 %v424_v36  ;;  %v435_v34 = vld [vmem:[#allocation7 + $0x188] sm:$0xff] }
  0xd6   :  { %585 = vmatpush.msrb.mxu2 %v454_v37  ;;  %613 = vmatpush.msrb.mxu3 %v488_v40  ;;  %v499_v36 = vld [vmem:[#allocation7 + $0x388] sm:$0xff]  ;;  %v401_v37 = vld [vmem:[#allocation7 + $0x78] sm:$0xff] }
  0xd7   :  { %556 = vmatpush.msrb.mxu1 %v422_v42  ;;  %v433_v40 = vld [vmem:[#allocation7 + $0x178] sm:$0xff] }
  0xd8   :  { %586 = vmatpush.msrb.mxu2 %v452_v43  ;;  %614 = vmatpush.msrb.mxu3 %v486_v44  ;;  %v497_v42 = vld [vmem:[#allocation7 + $0x378] sm:$0xff]  ;;  %v399_v43 = vld [vmem:[#allocation7 + $0x68] sm:$0xff] }
  0xd9   :  { %v431_v44 = vld [vmem:[#allocation7 + $0x168] sm:$0xff] }
 0x131   :  { %v2399_v31 = vpop.f32.mrf.mxu2  ;;  %v2401_v32 = vpop.f32.mrf.mxu3 }
 0x132   :  { %v1815_v35 = vpack.i.bf16 %v2401_v32, %v2399_v31 }
 0x133   :  { %v2405_v38 = vpop.f32.mrf.mxu0  ;;  %v2407_v39 = vpop.f32.mrf.mxu1 }
 0x134   :  { %v1820_v41 = vpack.i.bf16 %v2407_v39, %v2405_v38  ;;  %1816 = vrot.lane.b32.xlu0 %v1815_v35, %s2227_s17  ;;  %v392_v35 = vld [vmem:[#allocation7 + $0x30] sm:$0xff] }
 0x135   :  { %526 = vmatpush.msrb.mxu0 %v392_v35  ;;  %v465_v35 = vld [vmem:[#allocation7 + $0x278] sm:$0xff] }
 0x136   :  { %1821 = vrot.lane.b32.xlu1 %v1820_v41, %s2227_s17  ;;  %v390_v41 = vld [vmem:[#allocation7 + $0x20] sm:$0xff] }
 0x137   :  { %527 = vmatpush.msrb.mxu0 %v390_v41  ;;  %v463_v41 = vld [vmem:[#allocation7 + $0x268] sm:$0xff] }
 0x13a   :  { %v2413_v45 = vpop.f32.mrf.mxu2  ;;  %v2415_v46 = vpop.f32.mrf.mxu3 }
 0x13b   :  { %v1825_v47 = vpack.i.bf16 %v2415_v46, %v2413_v45  ;;  %v2419_v48 = vpop.f32.mrf.mxu0  ;;  %v2421_v49 = vpop.f32.mrf.mxu1 }
 0x13c   :  { %v1830_v50 = vpack.i.bf16 %v2421_v49, %v2419_v48 }
 0x13d   :  { %1826 = vrot.lane.b32.xlu2 %v1825_v47, %s2227_s17  ;;  %v388_v47 = vld [vmem:[#allocation7 + $0x10] sm:$0xff] }
 0x13e   :  { %1831 = vrot.lane.b32.xlu0 %v1830_v50, %s2227_s17  ;;  %v420_v50 = vld [vmem:[#allocation7 + $0x110] sm:$0xff]  ;;  %528 = vmatpush.msrb.mxu0 %v388_v47  ;;  %v461_v47 = vld [vmem:[#allocation7 + $0x258] sm:$0xff] }
 0x13f   :  { %557 = vmatpush.msrb.mxu1 %v420_v50  ;;  %v495_v50 = vld [vmem:[#allocation7 + $0x368] sm:$0xff] }
 0x142   :  { %v2427_v51 = vpop.f32.mrf.mxu2  ;;  %v2429_v52 = vpop.f32.mrf.mxu3 }
 0x143   :  { %v1835_v53 = vpack.i.bf16 %v2429_v52, %v2427_v51  ;;  %v2433_v54 = vpop.f32.mrf.mxu0  ;;  %v2435_v55 = vpop.f32.mrf.mxu1 }
 0x144   :  { %v1840_v56 = vpack.i.bf16 %v2435_v55, %v2433_v54 }
 0x145   :  { %1836 = vrot.lane.b32.xlu1 %v1835_v53, %s2227_s17  ;;  %v450_v53 = vld [vmem:[#allocation7 + $0x200] sm:$0xff] }
 0x146   :  { %1841 = vrot.lane.b32.xlu2 %v1840_v56, %s2227_s17  ;;  %v484_v56 = vld [vmem:[#allocation7 + $0x310] sm:$0xff]  ;;  %587 = vmatpush.msrb.mxu2 %v450_v53  ;;  %v397_v53 = vld [vmem:[#allocation7 + $0x58] sm:$0xff] }
 0x147   :  { %615 = vmatpush.msrb.mxu3 %v484_v56  ;;  %v429_v56 = vld [vmem:[#allocation7 + $0x158] sm:$0xff] }
 0x148   :  { %688 = vmatpush.msra.mxu2 %v481_v3  ;;  %v427_v3 = vld [vmem:[#allocation7 + $0x148] sm:$0xff] }
 0x149   :  { %616 = vmatpush.msrb.mxu3 %v482_v63  ;;  %v395_v63 = vld [vmem:[#allocation7 + $0x48] sm:$0xff] }
 0x14a   :  { %v2441_v57 = vpop.f32.mrf.mxu2  ;;  %v2443_v58 = vpop.f32.mrf.mxu3  ;;  %689 = vmatpush.msra.mxu2 %v479_v13  ;;  %v491_v13 = vld [vmem:[#allocation7 + $0x348] sm:$0xff] }
 0x14b   :  { %v1845_v59 = vpack.i.bf16 %v2443_v58, %v2441_v57  ;;  %v2447_v60 = vpop.f32.mrf.mxu0  ;;  %v2449_v61 = vpop.f32.mrf.mxu1  ;;  %717 = vmatpush.msra.mxu3 %v513_v14 }
 0x14c   :  { %v1850_v62 = vpack.i.bf16 %v2449_v61, %v2447_v60  ;;  %690 = vmatpush.msra.mxu2 %v477_v21  ;;  %v393_v21 = vld [vmem:[#allocation7 + $0x38] sm:$0xff] }
 0x14d   :  { %1846 = vrot.lane.b32.xlu0 %v1845_v59, %s2227_s17  ;;  %v386_v59 = vld [vmem:[#allocation7] sm:$0xff]  ;;  %718 = vmatpush.msra.mxu3 %v511_v22  ;;  %v425_v22 = vld [vmem:[#allocation7 + $0x138] sm:$0xff] }
 0x14e   :  { %1851 = vrot.lane.b32.xlu1 %v1850_v62, %s2227_s17  ;;  %v418_v62 = vld [vmem:[#allocation7 + $0x100] sm:$0xff]  ;;  %529 = vmatpush.msrb.mxu0 %v386_v59  ;;  %v459_v59 = vld [vmem:[#allocation7 + $0x248] sm:$0xff] }
 0x14f   :  { %558 = vmatpush.msrb.mxu1 %v418_v62  ;;  %691 = vmatpush.msra.mxu2 %v475_v25  ;;  %v493_v62 = vld [vmem:[#allocation7 + $0x358] sm:$0xff] }
 0x150   :  { %630 = vmatpush.msra.mxu0 %v417_v5  ;;  %719 = vmatpush.msra.mxu3 %v509_v26  ;;  %v457_v5 = vld [vmem:[#allocation7 + $0x238] sm:$0xff]  ;;  %v391_v26 = vld [vmem:[#allocation7 + $0x28] sm:$0xff] }
 0x151   :  { %659 = vmatpush.msra.mxu1 %v449_v10  ;;  %692 = vmatpush.msra.mxu2 %v473_v2  ;;  %v489_v25 = vld [vmem:[#allocation7 + $0x338] sm:$0xff] }
 0x152   :  { %631 = vmatpush.msra.mxu0 %v415_v17  ;;  %720 = vmatpush.msra.mxu3 %v507_v4 }
 0x153   :  { %660 = vmatpush.msra.mxu1 %v447_v20  ;;  %693 = vmatpush.msra.mxu2 %v471_v7  ;;  %v389_v7 = vld [vmem:[#allocation7 + $0x18] sm:$0xff] }
 0x154   :  { %632 = vmatpush.msra.mxu0 %v413_v23  ;;  %721 = vmatpush.msra.mxu3 %v505_v8  ;;  %v455_v23 = vld [vmem:[#allocation7 + $0x228] sm:$0xff] }
 0x155   :  { %661 = vmatpush.msra.mxu1 %v445_v24  ;;  %694 = vmatpush.msra.mxu2 %v469_v15  ;;  %v451_v15 = vld [vmem:[#allocation7 + $0x208] sm:$0xff] }
 0x156   :  { %633 = vmatpush.msra.mxu0 %v411_v1  ;;  %722 = vmatpush.msra.mxu3 %v503_v16  ;;  %v423_v1 = vld [vmem:[#allocation7 + $0x128] sm:$0xff] }
 0x157   :  { %662 = vmatpush.msra.mxu1 %v443_v9  ;;  %695 = vmatpush.msra.mxu2 %v467_v29 }
 0x158   :  { %634 = vmatpush.msra.mxu0 %v409_v6  ;;  %723 = vmatpush.msra.mxu3 %v501_v30  ;;  %v453_v6 = vld [vmem:[#allocation7 + $0x218] sm:$0xff] }
 0x159   :  { %663 = vmatpush.msra.mxu1 %v441_v0  ;;  %696 = vmatpush.msra.mxu2 %v465_v35  ;;  %v487_v0 = vld [vmem:[#allocation7 + $0x328] sm:$0xff] }
 0x15a   :  { %635 = vmatpush.msra.mxu0 %v407_v11  ;;  %724 = vmatpush.msra.mxu3 %v499_v36  ;;  %v387_v35 = vld [vmem:[#allocation7 + $0x8] sm:$0xff] }
 0x15b   :  { %664 = vmatpush.msra.mxu1 %v439_v12  ;;  %697 = vmatpush.msra.mxu2 %v463_v41  ;;  %v421_v12 = vld [vmem:[#allocation7 + $0x118] sm:$0xff]  ;;  %v419_v36 = vld [vmem:[#allocation7 + $0x108] sm:$0xff] }
 0x15c   :  { %636 = vmatpush.msra.mxu0 %v405_v27  ;;  %725 = vmatpush.msra.mxu3 %v497_v42 }
 0x15d   :  { %665 = vmatpush.msra.mxu1 %v437_v28  ;;  %698 = vmatpush.msra.mxu2 %v461_v47 }
 0x15e   :  { %637 = vmatpush.msra.mxu0 %v403_v33  ;;  %726 = vmatpush.msra.mxu3 %v495_v50 }
 0x15f   :  { %666 = vmatpush.msra.mxu1 %v435_v34  ;;  %699 = vmatpush.msra.mxu2 %v459_v59  ;;  %v485_v34 = vld [vmem:[#allocation7 + $0x318] sm:$0xff] }
 0x160   :  { %638 = vmatpush.msra.mxu0 %v401_v37  ;;  %727 = vmatpush.msra.mxu3 %v493_v62 }
 0x161   :  { %667 = vmatpush.msra.mxu1 %v433_v40  ;;  %700 = vmatpush.msra.mxu2 %v457_v5 }
 0x162   :  { %639 = vmatpush.msra.mxu0 %v399_v43  ;;  %728 = vmatpush.msra.mxu3 %v491_v13 }
 0x163   :  { %668 = vmatpush.msra.mxu1 %v431_v44  ;;  %701 = vmatpush.msra.mxu2 %v455_v23 }
 0x164   :  { %640 = vmatpush.msra.mxu0 %v397_v53  ;;  %729 = vmatpush.msra.mxu3 %v489_v25 }
 0x165   :  { %669 = vmatpush.msra.mxu1 %v429_v56  ;;  %702 = vmatpush.msra.mxu2 %v453_v6 }
 0x166   :  { %641 = vmatpush.msra.mxu0 %v395_v63  ;;  %730 = vmatpush.msra.mxu3 %v487_v0 }
 0x167   :  { %670 = vmatpush.msra.mxu1 %v427_v3  ;;  %703 = vmatpush.msra.mxu2 %v451_v15 }
 0x168   :  { %642 = vmatpush.msra.mxu0 %v393_v21  ;;  %731 = vmatpush.msra.mxu3 %v485_v34 }
 0x169   :  { %671 = vmatpush.msra.mxu1 %v425_v22 }
 0x16a   :  { %643 = vmatpush.msra.mxu0 %v391_v26 }
 0x16b   :  { %672 = vmatpush.msra.mxu1 %v423_v1 }
 0x16c   :  { %644 = vmatpush.msra.mxu0 %v389_v7 }
 0x16d   :  { %673 = vmatpush.msra.mxu1 %v421_v12 }
 0x16e   :  { %645 = vmatpush.msra.mxu0 %v387_v35 }
 0x16f   :  { %674 = vmatpush.msra.mxu1 %v419_v36 }
 0x197   :  { %v2455_v14 = vpop.permute.xlu2 %1826 }
 0x198   :  { %v1829_v8 = vunpack.i.h.bf16 %v2455_v14  ;;  %v1828_v16 = vunpack.i.l.bf16 %v2455_v14 }
 0x1a0   :  { %v1842_v41 = vpop.permute.xlu2 %1841 }
 0x1a1   :  { %v1844_v59 = vunpack.i.h.bf16 %v1842_v41  ;;  %v1843_v62 = vunpack.i.l.bf16 %v1842_v41 }
 0x1a3   :  { %v364_v5 = vsel %vm353_vm3, %v1843_v62, %v1844_v59 }
 0x1a4   :  { %v378_v13 = vmax.f32 %v2433_v54, %v364_v5 }
 0x1a6   :  { %v1817_v10 = vpop.permute.xlu0 %1816 }
 0x1a7   :  { %v1819_v17 = vunpack.i.h.bf16 %v1817_v10  ;;  %v1818_v20 = vunpack.i.l.bf16 %v1817_v10 }
 0x1a8   :  { %v1822_v24 = vpop.permute.xlu1 %1821 }
 0x1a9   :  { %v1824_v9 = vunpack.i.h.bf16 %v1822_v24  ;;  %v1823_v2 = vunpack.i.l.bf16 %v1822_v24  ;;  %v354_v4 = vsel %vm353_vm3, %v1818_v20, %v1819_v17 }
 0x1aa   :  { %v2462_v11 = vmax.f32 %v2399_v31, %v354_v4 }
 0x1ab   :  { %v362_v27 = vsel %vm353_vm3, %v1823_v2, %v1824_v9  ;;  %v358_v28 = vsel %vm353_vm3, %v1824_v9, %v1818_v20  ;;  %v366_v29 = vsel %vm353_vm3, %v1819_v17, %v1823_v2 }
 0x1ac   :  { %588 = vmatmul.f32.vlgmr.msrb.gmra.mxu2 %v2462_v11  ;;  %v2473_v31 = vmax.f32 %v2405_v38, %v362_v27  ;;  %v2476_v30 = vmax.f32 %v2407_v39, %v358_v28  ;;  %v2479_v33 = vmax.f32 %v2401_v32, %v366_v29  ;;  %v355_v38 = vsel %vm353_vm3, %v1828_v16, %v1829_v8  ;;  %v483_v39 = vld [vmem:[#allocation7 + $0x308] sm:$0xff] }
 0x1ad   :  { %v376_v42 = vmax.f32 %v2413_v45, %v355_v38  ;;  %732 = vmatpush.msra.mxu3 %v483_v39 }
 0x1ae   :  { %530 = vmatmul.f32.vlgmr.msrb.gmra.mxu0 %v2473_v31  ;;  %559 = vmatmul.f32.vlgmr.msrb.gmra.mxu1 %v2476_v30 }
 0x1af   :  { %617 = vmatmul.f32.vlgmr.msrb.gmra.mxu3 %v2479_v33 }
 0x1b0   :  { %v1832_v37 = vpop.permute.xlu0 %1831 }
 0x1b1   :  { %v1834_v32 = vunpack.i.h.bf16 %v1832_v37  ;;  %v1833_v40 = vunpack.i.l.bf16 %v1832_v37 }
 0x1b3   :  { %v363_v43 = vsel %vm353_vm3, %v1833_v40, %v1834_v32  ;;  %v359_v44 = vsel %vm353_vm3, %v1834_v32, %v1828_v16  ;;  %v367_v47 = vsel %vm353_vm3, %v1829_v8, %v1833_v40 }
 0x1b4   :  { %591 = vmatmul.f32.gmra.mxu2 %v376_v42  ;;  %v374_v50 = vmax.f32 %v2419_v48, %v363_v43  ;;  %v375_v53 = vmax.f32 %v2421_v49, %v359_v44  ;;  %v377_v56 = vmax.f32 %v2415_v46, %v367_v47 }
 0x1b6   :  { %533 = vmatmul.f32.gmra.mxu0 %v374_v50  ;;  %562 = vmatmul.f32.gmra.mxu1 %v375_v53 }
 0x1b7   :  { %v1837_v45 = vpop.permute.xlu1 %1836  ;;  %620 = vmatmul.f32.gmra.mxu3 %v377_v56 }
 0x1b8   :  { %v1839_v63 = vunpack.i.h.bf16 %v1837_v45  ;;  %v1838_v3 = vunpack.i.l.bf16 %v1837_v45 }
 0x1ba   :  { %v356_v10 = vsel %vm353_vm3, %v1838_v3, %v1839_v63  ;;  %v360_v48 = vsel %vm353_vm3, %v1844_v59, %v1838_v3  ;;  %v368_v46 = vsel %vm353_vm3, %v1839_v63, %v1843_v62 }
 0x1bb   :  { %v380_v49 = vmax.f32 %v2427_v51, %v356_v10  ;;  %v379_v14 = vmax.f32 %v2435_v55, %v360_v48  ;;  %v381_v17 = vmax.f32 %v2429_v52, %v368_v46 }
 0x1bd   :  { %594 = vmatmul.f32.gmra.mxu2 %v380_v49 }
 0x1be   :  { %536 = vmatmul.f32.gmra.mxu0 %v378_v13  ;;  %565 = vmatmul.f32.gmra.mxu1 %v379_v14 }
 0x1bf   :  { %v1847_v20 = vpop.permute.xlu0 %1846  ;;  %623 = vmatmul.f32.gmra.mxu3 %v381_v17 }
 0x1c0   :  { %v1849_v21 = vunpack.i.h.bf16 %v1847_v20  ;;  %v1848_v22 = vunpack.i.l.bf16 %v1847_v20  ;;  %v1852_v23 = vpop.permute.xlu1 %1851 }
 0x1c1   :  { %v1854_v24 = vunpack.i.h.bf16 %v1852_v23  ;;  %v1853_v25 = vunpack.i.l.bf16 %v1852_v23 }
 0x1c2   :  { %v357_v26 = vsel %vm353_vm3, %v1848_v22, %v1849_v21 }
 0x1c3   :  { %v384_v51 = vmax.f32 %v2441_v57, %v357_v26  ;;  %v365_v54 = vsel %vm353_vm3, %v1853_v25, %v1854_v24  ;;  %v361_v52 = vsel %vm353_vm3, %v1854_v24, %v1848_v22  ;;  %v369_v55 = vsel %vm353_vm3, %v1849_v21, %v1853_v25 }
 0x1c4   :  { %v382_v1 = vmax.f32 %v2447_v60, %v365_v54  ;;  %v383_v9 = vmax.f32 %v2449_v61, %v361_v52  ;;  %v385_v2 = vmax.f32 %v2443_v58, %v369_v55 }
 0x1c5   :  { %597 = vmatmul.f32.gmra.mxu2 %v384_v51 }
 0x1c6   :  { %539 = vmatmul.f32.gmra.mxu0 %v382_v1  ;;  %568 = vmatmul.f32.gmra.mxu1 %v383_v9 }
 0x1c7   :  { %626 = vmatmul.f32.gmra.mxu3 %v385_v2 }
 0x1cd   :  { %704 = vmatmul.f32.vlgmr.msra.gmra.mxu2 %v2462_v11 }
 0x1ce   :  { %646 = vmatmul.f32.vlgmr.msra.gmra.mxu0 %v2473_v31  ;;  %675 = vmatmul.f32.vlgmr.msra.gmra.mxu1 %v2476_v30 }
 0x1cf   :  { %733 = vmatmul.f32.vlgmr.msra.gmra.mxu3 %v2479_v33 }
 0x1d5   :  { %707 = vmatmul.f32.gmra.mxu2 %v376_v42 }
 0x1d6   :  { %649 = vmatmul.f32.gmra.mxu0 %v374_v50  ;;  %678 = vmatmul.f32.gmra.mxu1 %v375_v53 }
 0x1d7   :  { %736 = vmatmul.f32.gmra.mxu3 %v377_v56 }
 0x1dd   :  { %710 = vmatmul.f32.gmra.mxu2 %v380_v49 }
 0x1de   :  { %652 = vmatmul.f32.gmra.mxu0 %v378_v13  ;;  %681 = vmatmul.f32.gmra.mxu1 %v379_v14 }
 0x1df   :  { %739 = vmatmul.f32.gmra.mxu3 %v381_v17 }
 0x1e5   :  { %713 = vmatmul.f32.gmra.mxu2 %v384_v51 }
 0x1e6   :  { %655 = vmatmul.f32.gmra.mxu0 %v382_v1  ;;  %684 = vmatmul.f32.gmra.mxu1 %v383_v9 }
 0x1e7   :  { %742 = vmatmul.f32.gmra.mxu3 %v385_v2 }
 0x22b   :  { %v531_v57 = vpop.f32.mrf.mxu0  ;;  %v560_v58 = vpop.f32.mrf.mxu1 }
 0x22c   :  { %v561_v60 = vadd.f32 %v560_v58, %v531_v57 }
 0x22f   :  { %v589_v61 = vpop.f32.mrf.mxu2 }
 0x230   :  { %v590_v4 = vadd.f32 %v589_v61, %v561_v60 }
 0x232   :  { %v618_v6 = vpop.f32.mrf.mxu3 }
 0x233   :  { %v2524_v0 = vadd.f32 %v618_v6, %v590_v4  ;;  %v534_v7 = vpop.f32.mrf.mxu0  ;;  %v563_v8 = vpop.f32.mrf.mxu1 }
 0x234   :  { %v564_v38 = vadd.f32 %v563_v8, %v534_v7 }
 0x237   :  { %v592_v11 = vpop.f32.mrf.mxu2 }
 0x238   :  { %v593_v40 = vadd.f32 %v592_v11, %v564_v38 }
 0x23a   :  { %v621_v12 = vpop.f32.mrf.mxu3 }
 0x23b   :  { %v537_v15 = vpop.f32.mrf.mxu0  ;;  %v566_v16 = vpop.f32.mrf.mxu1  ;;  %v622_v42 = vadd.f32 %v621_v12, %v593_v40 }
 0x23c   :  { %v567_v47 = vadd.f32 %v566_v16, %v537_v15 }
 0x23d   :  { %2015 = vtanh.f32 %v622_v42 }
 0x240   :  { %v595_v27 = vpop.f32.mrf.mxu2 }
 0x241   :  { %v596_v62 = vadd.f32 %v595_v27, %v567_v47 }
 0x242   :  { %v624_v28 = vpop.f32.mrf.mxu3 }
 0x243   :  { %v540_v29 = vpop.f32.mrf.mxu0  ;;  %v569_v31 = vpop.f32.mrf.mxu1  ;;  %v625_v63 = vadd.f32 %v624_v28, %v596_v62 }
 0x244   :  { %v2526_v10 = vpop.eup %2015  ;;  %v570_v48 = vadd.f32 %v569_v31, %v540_v29 }
 0x248   :  { %v598_v30 = vpop.f32.mrf.mxu2 }
 0x249   :  { %v599_v14 = vadd.f32 %v598_v30, %v570_v48 }
 0x24a   :  { %v627_v33 = vpop.f32.mrf.mxu3 }
 0x24b   :  { %v647_v34 = vpop.f32.mrf.mxu0  ;;  %v676_v35 = vpop.f32.mrf.mxu1  ;;  %v628_v23 = vadd.f32 %v627_v33, %v599_v14 }
 0x24c   :  { %v677_v25 = vadd.f32 %v676_v35, %v647_v34 }
 0x250   :  { %v705_v36 = vpop.f32.mrf.mxu2 }
 0x251   :  { %v706_v55 = vadd.f32 %v705_v36, %v677_v25  ;;  %v817_v25 = vld [vmem:[#allocation8 + $0x3e8] sm:$0xff] }
 0x252   :  { %v734_v39 = vpop.f32.mrf.mxu3 }
 0x253   :  { %v650_v37 = vpop.f32.mrf.mxu0  ;;  %v679_v32 = vpop.f32.mrf.mxu1  ;;  %v735_v2 = vadd.f32 %v734_v39, %v706_v55  ;;  %v780_v55 = vld [vmem:[#allocation8 + $0x1a0] sm:$0xff] }
 0x254   :  { %v680_v41 = vadd.f32 %v679_v32, %v650_v37 }
 0x258   :  { %v708_v43 = vpop.f32.mrf.mxu2 }
 0x259   :  { %v709_v44 = vadd.f32 %v708_v43, %v680_v41 }
 0x25a   :  { %v737_v50 = vpop.f32.mrf.mxu3 }
 0x25b   :  { %v738_v53 = vadd.f32 %v737_v50, %v709_v44  ;;  %v653_v56 = vpop.f32.mrf.mxu0  ;;  %v682_v59 = vpop.f32.mrf.mxu1 }
 0x25c   :  { %v683_v45 = vadd.f32 %v682_v59, %v653_v56 }
 0x25d   :  { %2017 = vtanh.f32 %v738_v53 }
 0x25e   :  { %2019 = vtanh.f32 %v625_v63 }
 0x260   :  { %v711_v3 = vpop.f32.mrf.mxu2 }
 0x261   :  { %v712_v5 = vadd.f32 %v711_v3, %v683_v45 }
 0x262   :  { %v740_v46 = vpop.f32.mrf.mxu3 }
 0x263   :  { %v2528_v49 = vpop.eup %2017  ;;  %v741_v13 = vadd.f32 %v740_v46, %v712_v5  ;;  %v656_v17 = vpop.f32.mrf.mxu0 }
 0x264   :  { %v685_v20 = vpop.f32.mrf.mxu1  ;;  %v1855_v21 = vpack.i.bf16 %v2528_v49, %v2526_v10  ;;  %v2533_v51 = vpop.eup %2019 }
 0x265   :  { %2021 = vtanh.f32 %v741_v13  ;;  %v686_v22 = vadd.f32 %v685_v20, %v656_v17  ;;  %v100_v20 = vld [vmem:[#allocation5 + $0x8] sm:$0xff] }
 0x266   :  { %1856 = vrot.lane.b32.xlu1 %v1855_v21, %s2226_s3  ;;  %2023 = vtanh.f32 %v628_v23  ;;  %v816_v23 = vld [vmem:[#allocation8 + $0x3e0] sm:$0xff] }
 0x267   :  { %999 = vmatpush.msrb.mxu3 %v816_v23  ;;  %v793_v23 = vld [vmem:[#allocation8 + $0x268] sm:$0xff] }
 0x268   :  { %v714_v24 = vpop.f32.mrf.mxu2 }
 0x269   :  { %v715_v26 = vadd.f32 %v714_v24, %v686_v22  ;;  %v102_v22 = vld [vmem:[#allocation5 + $0x58] sm:$0xff]  ;;  %v785_v24 = vld [vmem:[#allocation8 + $0x1e8] sm:$0xff] }
 0x26a   :  { %v743_v54 = vpop.f32.mrf.mxu3 }
 0x26b   :  { %v2535_v52 = vpop.eup %2021  ;;  %v744_v1 = vadd.f32 %v743_v54, %v715_v26  ;;  %v782_v26 = vld [vmem:[#allocation8 + $0x1c0] sm:$0xff]  ;;  %v783_v54 = vld [vmem:[#allocation8 + $0x1c8] sm:$0xff] }
 0x26c   :  { %v1875_v9 = vpack.i.bf16 %v2535_v52, %v2533_v51  ;;  %v2541_v57 = vpop.eup %2023 }
 0x26d   :  { %2025 = vtanh.f32 %v744_v1  ;;  %v812_v1 = vld [vmem:[#allocation8 + $0x3a0] sm:$0xff] }
 0x26e   :  { %1876 = vrot.lane.b32.xlu1 %v1875_v9, %s2228_s18  ;;  %1861 = vrot.lane.b32.xlu0 %v1875_v9, %s2226_s3  ;;  %2027 = vtanh.f32 %v735_v2  ;;  %v781_v9 = vld [vmem:[#allocation8 + $0x1a8] sm:$0xff] }
 0x26f   :  { %2029 = vtanh.f32 %v2524_v0  ;;  %v813_v2 = vld [vmem:[#allocation8 + $0x3a8] sm:$0xff] }
 0x273   :  { %v2543_v58 = vpop.eup %2025 }
 0x274   :  { %v1885_v60 = vpack.i.bf16 %v2543_v58, %v2541_v57  ;;  %v2550_v61 = vpop.eup %2027 }
 0x275   :  { %v2552_v4 = vpop.eup %2029 }
 0x276   :  { %1886 = vrot.lane.b32.xlu0 %v1885_v60, %s2228_s18  ;;  %1866 = vrot.lane.b32.xlu2 %v1885_v60, %s2226_s3  ;;  %v1890_v6 = vpack.i.bf16 %v2550_v61, %v2552_v4 }
 0x27e   :  { %1891 = vrot.lane.b32.xlu0 %v1890_v6, %s2228_s18  ;;  %1871 = vrot.lane.b32.xlu2 %v1890_v6, %s2226_s3 }
 0x286   :  { %1881 = vrot.lane.b32.xlu2 %v1855_v21, %s2228_s18  ;;  %v101_v21 = vld [vmem:[#allocation5 + $0x30] sm:$0xff] }
 0x2d0   :  { %v1867_v7 = vpop.permute.xlu2 %1866 }
 0x2d1   :  { %v1869_v8 = vunpack.i.h.bf16 %v1867_v7  ;;  %v1868_v0 = vunpack.i.l.bf16 %v1867_v7  ;;  %v811_v7 = vld [vmem:[#allocation8 + $0x388] sm:$0xff] }
 0x2d3   :  { %v862_v11 = vsel %vm142_vm1, %v1868_v0, %v1869_v8  ;;  %v866_v12 = vsel %vm142_vm1, %v1869_v8, %v1868_v0  ;;  %v776_v8 = vld [vmem:[#allocation8 + $0x160] sm:$0xff] }
 0x2d4   :  { %884 = vmatpush.msrb.mxu0 %v862_v11  ;;  %913 = vmatpush.msrb.mxu1 %v866_v12  ;;  %v808_v0 = vld [vmem:[#allocation8 + $0x360] sm:$0xff]  ;;  %v777_v11 = vld [vmem:[#allocation8 + $0x168] sm:$0xff] }
 0x2d5   :  { %v809_v12 = vld [vmem:[#allocation8 + $0x368] sm:$0xff] }
 0x2d8   :  { %v1857_v15 = vpop.permute.xlu1 %1856  ;;  %v1872_v16 = vpop.permute.xlu2 %1871 }
 0x2d9   :  { %v1859_v28 = vunpack.i.h.bf16 %v1857_v15  ;;  %v1858_v29 = vunpack.i.l.bf16 %v1857_v15  ;;  %v1874_v33 = vunpack.i.h.bf16 %v1872_v16  ;;  %v1873_v34 = vunpack.i.l.bf16 %v1872_v16 }
 0x2db   :  { %v860_v38 = vsel %vm142_vm1, %v1858_v29, %v1859_v28  ;;  %v864_v39 = vsel %vm142_vm1, %v1859_v28, %v1858_v29  ;;  %v859_v32 = vsel %vm142_vm1, %v1873_v34, %v1874_v33  ;;  %v863_v40 = vsel %vm142_vm1, %v1874_v33, %v1873_v34 }
 0x2e0   :  { %v1862_v27 = vpop.permute.xlu0 %1861  ;;  %v1877_v37 = vpop.permute.xlu1 %1876 }
 0x2e1   :  { %v1864_v31 = vunpack.i.h.bf16 %v1862_v27  ;;  %v1863_v30 = vunpack.i.l.bf16 %v1862_v27  ;;  %v1882_v41 = vpop.permute.xlu2 %1881  ;;  %v1879_v43 = vunpack.i.h.bf16 %v1877_v37  ;;  %v1878_v44 = vunpack.i.l.bf16 %v1877_v37  ;;  %v772_v37 = vld [vmem:[#allocation8 + $0x120] sm:$0xff] }
 0x2e2   :  { %v1884_v53 = vunpack.i.h.bf16 %v1882_v41  ;;  %v1883_v56 = vunpack.i.l.bf16 %v1882_v41  ;;  %v805_v41 = vld [vmem:[#allocation8 + $0x328] sm:$0xff] }
 0x2e3   :  { %v861_v35 = vsel %vm142_vm1, %v1863_v30, %v1864_v31  ;;  %v865_v36 = vsel %vm142_vm1, %v1864_v31, %v1863_v30  ;;  %v837_v45 = vsel %vm834_vm4, %v1878_v44, %v1879_v43  ;;  %v841_v63 = vsel %vm834_vm4, %v1879_v43, %v1878_v44  ;;  %v802_v43 = vld [vmem:[#allocation8 + $0x300] sm:$0xff]  ;;  %v771_v44 = vld [vmem:[#allocation8 + $0x108] sm:$0xff] }
 0x2e4   :  { %885 = vmatpush.msrb.mxu0 %v861_v35  ;;  %914 = vmatpush.msrb.mxu1 %v865_v36  ;;  %v836_v3 = vsel %vm834_vm4, %v1883_v56, %v1884_v53  ;;  %v840_v5 = vsel %vm834_vm4, %v1884_v53, %v1883_v56  ;;  %v774_v35 = vld [vmem:[#allocation8 + $0x140] sm:$0xff]  ;;  %v769_v56 = vld [vmem:[#allocation8 + $0xe8] sm:$0xff] }
 0x2e5   :  { %v806_v36 = vld [vmem:[#allocation8 + $0x340] sm:$0xff] }
 0x2e6   :  { %886 = vmatpush.msrb.mxu0 %v860_v38  ;;  %915 = vmatpush.msrb.mxu1 %v864_v39  ;;  %v775_v38 = vld [vmem:[#allocation8 + $0x148] sm:$0xff]  ;;  %v800_v53 = vld [vmem:[#allocation8 + $0x2e0] sm:$0xff] }
 0x2e7   :  { %v807_v39 = vld [vmem:[#allocation8 + $0x348] sm:$0xff] }
 0x2e8   :  { %v1887_v42 = vpop.permute.xlu0 %1886  ;;  %887 = vmatpush.msrb.mxu0 %v859_v32  ;;  %916 = vmatpush.msrb.mxu1 %v863_v40  ;;  %v804_v32 = vld [vmem:[#allocation8 + $0x320] sm:$0xff]  ;;  %v773_v40 = vld [vmem:[#allocation8 + $0x128] sm:$0xff] }
 0x2e9   :  { %v1889_v47 = vunpack.i.h.bf16 %v1887_v42  ;;  %v1888_v50 = vunpack.i.l.bf16 %v1887_v42  ;;  %v770_v42 = vld [vmem:[#allocation8 + $0x100] sm:$0xff] }
 0x2eb   :  { %v838_v59 = vsel %vm834_vm4, %v1888_v50, %v1889_v47  ;;  %v842_v62 = vsel %vm834_vm4, %v1889_v47, %v1888_v50  ;;  %v803_v47 = vld [vmem:[#allocation8 + $0x308] sm:$0xff]  ;;  %v768_v50 = vld [vmem:[#allocation8 + $0xe0] sm:$0xff] }
 0x2ec   :  { %888 = vmatpush.msrb.mxu0 %v838_v59  ;;  %917 = vmatpush.msrb.mxu1 %v842_v62  ;;  %v801_v59 = vld [vmem:[#allocation8 + $0x2e8] sm:$0xff]  ;;  %v766_v62 = vld [vmem:[#allocation8 + $0xc0] sm:$0xff] }
 0x2ee   :  { %889 = vmatpush.msrb.mxu0 %v837_v45  ;;  %918 = vmatpush.msrb.mxu1 %v841_v63  ;;  %v798_v45 = vld [vmem:[#allocation8 + $0x2c0] sm:$0xff]  ;;  %v767_v63 = vld [vmem:[#allocation8 + $0xc8] sm:$0xff] }
 0x2f0   :  { %v1892_v48 = vpop.permute.xlu0 %1891  ;;  %890 = vmatpush.msrb.mxu0 %v836_v3  ;;  %919 = vmatpush.msrb.mxu1 %v840_v5  ;;  %v799_v3 = vld [vmem:[#allocation8 + $0x2c8] sm:$0xff]  ;;  %v764_v5 = vld [vmem:[#allocation8 + $0xa0] sm:$0xff] }
 0x2f1   :  { %v1894_v46 = vunpack.i.h.bf16 %v1892_v48  ;;  %v1893_v13 = vunpack.i.l.bf16 %v1892_v48  ;;  %v796_v48 = vld [vmem:[#allocation8 + $0x2a0] sm:$0xff] }
 0x2f3   :  { %v835_v14 = vsel %vm834_vm4, %v1893_v13, %v1894_v46  ;;  %v839_v17 = vsel %vm834_vm4, %v1894_v46, %v1893_v13  ;;  %v765_v46 = vld [vmem:[#allocation8 + $0xa8] sm:$0xff] }
 0x2f4   :  { %891 = vmatpush.msrb.mxu0 %v835_v14  ;;  %920 = vmatpush.msrb.mxu1 %v839_v17  ;;  %v797_v13 = vld [vmem:[#allocation8 + $0x2a8] sm:$0xff]  ;;  %v762_v14 = vld [vmem:[#allocation8 + $0x80] sm:$0xff] }
 0x2f5   :  { %v794_v17 = vld [vmem:[#allocation8 + $0x280] sm:$0xff] }
 0x2f6   :  { %892 = vmatpush.msrb.mxu0 %v2541_v57  ;;  %921 = vmatpush.msrb.mxu1 %v2543_v58  ;;  %v778_v57 = vld [vmem:[#allocation8 + $0x180] sm:$0xff] }
 0x2f7   :  { %v810_v58 = vld [vmem:[#allocation8 + $0x380] sm:$0xff] }
 0x2f8   :  { %893 = vmatpush.msrb.mxu0 %v2533_v51  ;;  %922 = vmatpush.msrb.mxu1 %v2535_v52  ;;  %v814_v51 = vld [vmem:[#allocation8 + $0x3c0] sm:$0xff]  ;;  %v815_v52 = vld [vmem:[#allocation8 + $0x3c8] sm:$0xff] }
 0x2f9   :  { %1000 = vmatpush.msrb.mxu3 %v814_v51  ;;  %v791_v51 = vld [vmem:[#allocation8 + $0x248] sm:$0xff] }
 0x2fa   :  { %894 = vmatpush.msrb.mxu0 %v2526_v10  ;;  %923 = vmatpush.msrb.mxu1 %v2528_v49  ;;  %v103_v10 = vld [vmem:[#allocation5 + $0x80] sm:$0xff] }
 0x2fb   :  { %v784_v49 = vld [vmem:[#allocation8 + $0x1e0] sm:$0xff]  ;;  %1001 = vmatpush.msrb.mxu3 %v812_v1  ;;  %v789_v1 = vld [vmem:[#allocation8 + $0x228] sm:$0xff] }
 0x2fc   :  { %895 = vmatpush.msrb.mxu0 %v2552_v4  ;;  %924 = vmatpush.msrb.mxu1 %v2550_v61  ;;  %v779_v4 = vld [vmem:[#allocation8 + $0x188] sm:$0xff] }
 0x2fd   :  { %1690 = vmatmul.msk.f32.vlgmr.msrb.gmra.mxu0 %vm867_vm5, %v100_v20  ;;  %1694 = vmatmul.msk.f32.vlgmr.msrb.gmra.mxu1 %vm867_vm5, %v100_v20  ;;  %v763_v20 = vld [vmem:[#allocation8 + $0x88] sm:$0xff] }
 0x2fe   :  { %970 = vmatpush.msrb.mxu2 %v784_v49  ;;  %1028 = vmatpush.msra.mxu0 %v785_v24  ;;  %v761_v49 = vld [vmem:[#allocation8 + $0x68] sm:$0xff]  ;;  %v758_v24 = vld [vmem:[#allocation8 + $0x40] sm:$0xff] }
 0x2ff   :  { %1057 = vmatpush.msra.mxu1 %v817_v25  ;;  %1002 = vmatpush.msrb.mxu3 %v810_v58  ;;  %v790_v25 = vld [vmem:[#allocation8 + $0x240] sm:$0xff]  ;;  %v787_v58 = vld [vmem:[#allocation8 + $0x208] sm:$0xff] }
 0x300   :  { %971 = vmatpush.msrb.mxu2 %v782_v26  ;;  %1029 = vmatpush.msra.mxu0 %v783_v54  ;;  %v759_v26 = vld [vmem:[#allocation8 + $0x48] sm:$0xff]  ;;  %v756_v54 = vld [vmem:[#allocation8 + $0x20] sm:$0xff] }
 0x301   :  { %1058 = vmatpush.msra.mxu1 %v815_v52  ;;  %1003 = vmatpush.msrb.mxu3 %v808_v0  ;;  %v788_v52 = vld [vmem:[#allocation8 + $0x220] sm:$0xff] }
 0x302   :  { %972 = vmatpush.msrb.mxu2 %v780_v55  ;;  %1030 = vmatpush.msra.mxu0 %v781_v9  ;;  %v757_v55 = vld [vmem:[#allocation8 + $0x28] sm:$0xff]  ;;  %v754_v9 = vld [vmem:[#allocation8] sm:$0xff] }
 0x303   :  { %1059 = vmatpush.msra.mxu1 %v813_v2  ;;  %1004 = vmatpush.msrb.mxu3 %v806_v36  ;;  %v786_v2 = vld [vmem:[#allocation8 + $0x200] sm:$0xff] }
 0x304   :  { %973 = vmatpush.msrb.mxu2 %v778_v57  ;;  %1031 = vmatpush.msra.mxu0 %v779_v4  ;;  %v755_v57 = vld [vmem:[#allocation8 + $0x8] sm:$0xff] }
 0x305   :  { %1691 = vmatmul.msk.f32.gmra.mxu0 %vm867_vm5, %v101_v21  ;;  %1695 = vmatmul.msk.f32.gmra.mxu1 %vm867_vm5, %v101_v21  ;;  %v795_v21 = vld [vmem:[#allocation8 + $0x288] sm:$0xff] }
 0x306   :  { %1060 = vmatpush.msra.mxu1 %v811_v7  ;;  %974 = vmatpush.msrb.mxu2 %v776_v8 }
 0x307   :  { %1032 = vmatpush.msra.mxu0 %v777_v11  ;;  %1005 = vmatpush.msrb.mxu3 %v804_v32 }
 0x308   :  { %1061 = vmatpush.msra.mxu1 %v809_v12  ;;  %975 = vmatpush.msrb.mxu2 %v774_v35 }
 0x309   :  { %1033 = vmatpush.msra.mxu0 %v775_v38  ;;  %1006 = vmatpush.msrb.mxu3 %v802_v43 }
 0x30a   :  { %1062 = vmatpush.msra.mxu1 %v807_v39  ;;  %976 = vmatpush.msrb.mxu2 %v772_v37 }
 0x30b   :  { %1034 = vmatpush.msra.mxu0 %v773_v40  ;;  %1007 = vmatpush.msrb.mxu3 %v800_v53 }
 0x30c   :  { %1063 = vmatpush.msra.mxu1 %v805_v41  ;;  %977 = vmatpush.msrb.mxu2 %v770_v42 }
 0x30d   :  { %1692 = vmatmul.msk.f32.gmra.mxu0 %vm867_vm5, %v102_v22  ;;  %1696 = vmatmul.msk.f32.gmra.mxu1 %vm867_vm5, %v102_v22  ;;  %v760_v22 = vld [vmem:[#allocation8 + $0x60] sm:$0xff] }
 0x30e   :  { %1035 = vmatpush.msra.mxu0 %v771_v44  ;;  %1064 = vmatpush.msra.mxu1 %v803_v47 }
 0x30f   :  { %978 = vmatpush.msrb.mxu2 %v768_v50  ;;  %1008 = vmatpush.msrb.mxu3 %v798_v45 }
 0x310   :  { %1036 = vmatpush.msra.mxu0 %v769_v56  ;;  %1065 = vmatpush.msra.mxu1 %v801_v59 }
 0x311   :  { %979 = vmatpush.msrb.mxu2 %v766_v62  ;;  %1009 = vmatpush.msrb.mxu3 %v796_v48 }
 0x312   :  { %1037 = vmatpush.msra.mxu0 %v767_v63  ;;  %1066 = vmatpush.msra.mxu1 %v799_v3 }
 0x313   :  { %980 = vmatpush.msrb.mxu2 %v764_v5  ;;  %1010 = vmatpush.msrb.mxu3 %v794_v17 }
 0x314   :  { %1038 = vmatpush.msra.mxu0 %v765_v46  ;;  %1067 = vmatpush.msra.mxu1 %v797_v13 }
 0x315   :  { %1693 = vmatmul.msk.f32.gmra.mxu0 %vm867_vm5, %v103_v10  ;;  %1697 = vmatmul.msk.f32.gmra.mxu1 %vm867_vm5, %v103_v10  ;;  %v792_v10 = vld [vmem:[#allocation8 + $0x260] sm:$0xff] }
 0x316   :  { %981 = vmatpush.msrb.mxu2 %v762_v14  ;;  %1039 = vmatpush.msra.mxu0 %v763_v20 }
 0x317   :  { %1068 = vmatpush.msra.mxu1 %v795_v21  ;;  %1011 = vmatpush.msrb.mxu3 %v792_v10 }
 0x318   :  { %982 = vmatpush.msrb.mxu2 %v760_v22  ;;  %1040 = vmatpush.msra.mxu0 %v761_v49 }
 0x319   :  { %1069 = vmatpush.msra.mxu1 %v793_v23  ;;  %1012 = vmatpush.msrb.mxu3 %v790_v25 }
 0x31a   :  { %983 = vmatpush.msrb.mxu2 %v758_v24  ;;  %1041 = vmatpush.msra.mxu0 %v759_v26 }
 0x31b   :  { %1070 = vmatpush.msra.mxu1 %v791_v51  ;;  %1013 = vmatpush.msrb.mxu3 %v788_v52 }
 0x31c   :  { %984 = vmatpush.msrb.mxu2 %v756_v54  ;;  %1042 = vmatpush.msra.mxu0 %v757_v55 }
 0x31d   :  { %1071 = vmatpush.msra.mxu1 %v789_v1  ;;  %1014 = vmatpush.msrb.mxu3 %v786_v2 }
 0x31e   :  { %985 = vmatpush.msrb.mxu2 %v754_v9  ;;  %1043 = vmatpush.msra.mxu0 %v755_v57 }
 0x31f   :  { %1072 = vmatpush.msra.mxu1 %v787_v58 }
 0x37a   :  { %v2608_v60 = vpop.f32.mrf.mxu0  ;;  %v2610_v61 = vpop.f32.mrf.mxu1 }
 0x37b   :  { %v1895_v6 = vpack.i.bf16 %v2610_v61, %v2608_v60 }
 0x37d   :  { %1896 = vrot.lane.b32.xlu1 %v1895_v6, %s2228_s18 }
 0x382   :  { %v2615_v15 = vpop.f32.mrf.mxu0  ;;  %v2617_v16 = vpop.f32.mrf.mxu1 }
 0x383   :  { %v1900_v27 = vpack.i.bf16 %v2617_v16, %v2615_v15 }
 0x385   :  { %1901 = vrot.lane.b32.xlu2 %v1900_v27, %s2228_s18 }
 0x38a   :  { %v2622_v28 = vpop.f32.mrf.mxu0  ;;  %v2624_v29 = vpop.f32.mrf.mxu1 }
 0x38b   :  { %v1905_v31 = vpack.i.bf16 %v2624_v29, %v2622_v28 }
 0x38d   :  { %1906 = vrot.lane.b32.xlu0 %v1905_v31, %s2228_s18 }
 0x392   :  { %v2629_v30 = vpop.f32.mrf.mxu0  ;;  %v2631_v33 = vpop.f32.mrf.mxu1 }
 0x393   :  { %v1910_v34 = vpack.i.bf16 %v2631_v33, %v2629_v30 }
 0x395   :  { %1911 = vrot.lane.b32.xlu1 %v1910_v34, %s2228_s18 }
 0x3df   :  { %v1902_v8 = vpop.permute.xlu2 %1901 }
 0x3e0   :  { %v1904_v31 = vunpack.i.h.bf16 %v1902_v8  ;;  %v1903_v34 = vunpack.i.l.bf16 %v1902_v8 }
 0x3e2   :  { %v955_v35 = vsel %vm834_vm4, %v1903_v34, %v1904_v31  ;;  %v959_v36 = vsel %vm834_vm4, %v1904_v31, %v1903_v34 }
 0x3e3   :  { %v964_v38 = vmax.f32 %v2615_v15, %v955_v35  ;;  %v965_v39 = vmax.f32 %v2617_v16, %v959_v36 }
 0x3ef   :  { %v1897_v4 = vpop.permute.xlu1 %1896 }
 0x3f0   :  { %v1899_v6 = vunpack.i.h.bf16 %v1897_v4  ;;  %v1898_v7 = vunpack.i.l.bf16 %v1897_v4 }
 0x3f2   :  { %v954_v0 = vsel %vm834_vm4, %v1898_v7, %v1899_v6  ;;  %v958_v11 = vsel %vm834_vm4, %v1899_v6, %v1898_v7 }
 0x3f3   :  { %v962_v12 = vmax.f32 %v2608_v60, %v954_v0  ;;  %v963_v27 = vmax.f32 %v2610_v61, %v958_v11 }
 0x3f5   :  { %986 = vmatmul.f32.vlgmr.msrb.gmra.mxu2 %v962_v12  ;;  %1015 = vmatmul.f32.vlgmr.msrb.gmra.mxu3 %v963_v27 }
 0x3f6   :  { %1044 = vmatmul.f32.vlgmr.msra.gmra.mxu0 %v962_v12  ;;  %1073 = vmatmul.f32.vlgmr.msra.gmra.mxu1 %v963_v27 }
 0x3fd   :  { %989 = vmatmul.f32.gmra.mxu2 %v964_v38  ;;  %1018 = vmatmul.f32.gmra.mxu3 %v965_v39 }
 0x3fe   :  { %1047 = vmatmul.f32.gmra.mxu0 %v964_v38  ;;  %1076 = vmatmul.f32.gmra.mxu1 %v965_v39 }
 0x3ff   :  { %v1907_v60 = vpop.permute.xlu0 %1906 }
 0x400   :  { %v1909_v61 = vunpack.i.h.bf16 %v1907_v60  ;;  %v1908_v37 = vunpack.i.l.bf16 %v1907_v60 }
 0x402   :  { %v956_v32 = vsel %vm834_vm4, %v1908_v37, %v1909_v61  ;;  %v960_v40 = vsel %vm834_vm4, %v1909_v61, %v1908_v37 }
 0x403   :  { %v966_v41 = vmax.f32 %v2622_v28, %v956_v32  ;;  %v967_v42 = vmax.f32 %v2624_v29, %v960_v40 }
 0x405   :  { %992 = vmatmul.f32.gmra.mxu2 %v966_v41  ;;  %1021 = vmatmul.f32.gmra.mxu3 %v967_v42 }
 0x406   :  { %1050 = vmatmul.f32.gmra.mxu0 %v966_v41  ;;  %1079 = vmatmul.f32.gmra.mxu1 %v967_v42 }
 0x407   :  { %v1912_v15 = vpop.permute.xlu1 %1911 }
 0x408   :  { %v1914_v16 = vunpack.i.h.bf16 %v1912_v15  ;;  %v1913_v43 = vunpack.i.l.bf16 %v1912_v15 }
 0x40a   :  { %v957_v44 = vsel %vm834_vm4, %v1913_v43, %v1914_v16  ;;  %v961_v47 = vsel %vm834_vm4, %v1914_v16, %v1913_v43 }
 0x40b   :  { %v968_v50 = vmax.f32 %v2629_v30, %v957_v44  ;;  %v969_v53 = vmax.f32 %v2631_v33, %v961_v47 }
 0x40d   :  { %995 = vmatmul.f32.gmra.mxu2 %v968_v50  ;;  %1024 = vmatmul.f32.gmra.mxu3 %v969_v53 }
 0x40e   :  { %1053 = vmatmul.f32.gmra.mxu0 %v968_v50  ;;  %1082 = vmatmul.f32.gmra.mxu1 %v969_v53 }
 0x473   :  { %v1045_v28 = vpop.f32.mrf.mxu0  ;;  %v1074_v29 = vpop.f32.mrf.mxu1 }
 0x474   :  { %v1075_v1 = vadd.f32 %v1074_v29, %v1045_v28 }
 0x478   :  { %v987_v56 = vpop.f32.mrf.mxu2  ;;  %v1016_v59 = vpop.f32.mrf.mxu3 }
 0x479   :  { %v1017_v55 = vadd.f32 %v1016_v59, %v987_v56 }
 0x47b   :  { %v1048_v62 = vpop.f32.mrf.mxu0  ;;  %v1077_v45 = vpop.f32.mrf.mxu1 }
 0x47c   :  { %v1078_v63 = vadd.f32 %v1077_v45, %v1048_v62 }
 0x47e   :  { %2031 = vtanh.f32 %v1078_v63 }
 0x480   :  { %v990_v3 = vpop.f32.mrf.mxu2  ;;  %v1019_v5 = vpop.f32.mrf.mxu3 }
 0x481   :  { %v1020_v48 = vadd.f32 %v1019_v5, %v990_v3 }
 0x483   :  { %2033 = vtanh.f32 %v1020_v48  ;;  %v1051_v46 = vpop.f32.mrf.mxu0  ;;  %v1080_v30 = vpop.f32.mrf.mxu1 }
 0x484   :  { %v1081_v13 = vadd.f32 %v1080_v30, %v1051_v46  ;;  %v2660_v33 = vpop.eup %2031 }
 0x486   :  { %2035 = vtanh.f32 %v1081_v13 }
 0x488   :  { %v993_v14 = vpop.f32.mrf.mxu2  ;;  %v1022_v17 = vpop.f32.mrf.mxu3 }
 0x489   :  { %v2662_v20 = vpop.eup %2033  ;;  %v1023_v21 = vadd.f32 %v1022_v17, %v993_v14  ;;  %v104_v17 = vld [vmem:[#allocation5 + $0x10] sm:$0xff] }
 0x48a   :  { %v1915_v22 = vpack.i.bf16 %v2660_v33, %v2662_v20 }
 0x48b   :  { %2037 = vtanh.f32 %v1023_v21  ;;  %v1054_v10 = vpop.f32.mrf.mxu0  ;;  %v1083_v49 = vpop.f32.mrf.mxu1  ;;  %v105_v21 = vld [vmem:[#allocation5 + $0x38] sm:$0xff] }
 0x48c   :  { %1916 = vrot.lane.b32.xlu1 %v1915_v22, %s2226_s3  ;;  %v1084_v23 = vadd.f32 %v1083_v49, %v1054_v10  ;;  %v2667_v24 = vpop.eup %2035  ;;  %v1156_v10 = vld [vmem:[#allocation8 + $0x3f0] sm:$0xff]  ;;  %v1125_v49 = vld [vmem:[#allocation8 + $0x1f8] sm:$0xff] }
 0x48d   :  { %1337 = vmatpush.msrb.mxu1 %v1156_v10  ;;  %v1133_v10 = vld [vmem:[#allocation8 + $0x278] sm:$0xff] }
 0x48e   :  { %2039 = vtanh.f32 %v1084_v23  ;;  %v1157_v23 = vld [vmem:[#allocation8 + $0x3f8] sm:$0xff] }
 0x490   :  { %v996_v25 = vpop.f32.mrf.mxu2  ;;  %v1025_v26 = vpop.f32.mrf.mxu3 }
 0x491   :  { %v2669_v51 = vpop.eup %2037  ;;  %v1026_v54 = vadd.f32 %v1025_v26, %v996_v25  ;;  %v1154_v25 = vld [vmem:[#allocation8 + $0x3d0] sm:$0xff]  ;;  %v1123_v26 = vld [vmem:[#allocation8 + $0x1d8] sm:$0xff] }
 0x492   :  { %v1935_v52 = vpack.i.bf16 %v2667_v24, %v2669_v51  ;;  %1338 = vmatpush.msrb.mxu1 %v1154_v25  ;;  %v1131_v25 = vld [vmem:[#allocation8 + $0x258] sm:$0xff] }
 0x493   :  { %2041 = vtanh.f32 %v1026_v54  ;;  %v1120_v54 = vld [vmem:[#allocation8 + $0x1b0] sm:$0xff] }
 0x494   :  { %1936 = vrot.lane.b32.xlu1 %v1935_v52, %s2228_s18  ;;  %1921 = vrot.lane.b32.xlu0 %v1935_v52, %s2226_s3  ;;  %v2675_v9 = vpop.eup %2039  ;;  %2043 = vtanh.f32 %v1017_v55  ;;  %v1152_v52 = vld [vmem:[#allocation8 + $0x3b0] sm:$0xff]  ;;  %v1121_v55 = vld [vmem:[#allocation8 + $0x1b8] sm:$0xff] }
 0x495   :  { %2045 = vtanh.f32 %v1075_v1  ;;  %v1153_v1 = vld [vmem:[#allocation8 + $0x3b8] sm:$0xff]  ;;  %1339 = vmatpush.msrb.mxu1 %v1152_v52 }
 0x496   :  { %v1129_v52 = vld [vmem:[#allocation8 + $0x238] sm:$0xff] }
 0x499   :  { %v2677_v2 = vpop.eup %2041 }
 0x49a   :  { %v1945_v57 = vpack.i.bf16 %v2675_v9, %v2677_v2  ;;  %v2683_v58 = vpop.eup %2043 }
 0x49b   :  { %v2685_v4 = vpop.eup %2045 }
 0x49c   :  { %1946 = vrot.lane.b32.xlu0 %v1945_v57, %s2228_s18  ;;  %1926 = vrot.lane.b32.xlu2 %v1945_v57, %s2226_s3  ;;  %v1950_v6 = vpack.i.bf16 %v2685_v4, %v2683_v58 }
 0x4a4   :  { %1951 = vrot.lane.b32.xlu0 %v1950_v6, %s2228_s18  ;;  %1931 = vrot.lane.b32.xlu2 %v1950_v6, %s2226_s3 }
 0x4ac   :  { %1941 = vrot.lane.b32.xlu2 %v1915_v22, %s2228_s18  ;;  %v106_v22 = vld [vmem:[#allocation5 + $0x60] sm:$0xff] }
 0x4f6   :  { %v1927_v7 = vpop.permute.xlu2 %1926 }
 0x4f7   :  { %v1929_v8 = vunpack.i.h.bf16 %v1927_v7  ;;  %v1928_v0 = vunpack.i.l.bf16 %v1927_v7  ;;  %v1151_v7 = vld [vmem:[#allocation8 + $0x398] sm:$0xff] }
 0x4f9   :  { %v1201_v11 = vsel %vm142_vm1, %v1928_v0, %v1929_v8  ;;  %v1205_v12 = vsel %vm142_vm1, %v1929_v8, %v1928_v0  ;;  %v1116_v8 = vld [vmem:[#allocation8 + $0x170] sm:$0xff] }
 0x4fa   :  { %1222 = vmatpush.msra.mxu2 %v1201_v11  ;;  %1251 = vmatpush.msra.mxu3 %v1205_v12  ;;  %v1148_v0 = vld [vmem:[#allocation8 + $0x370] sm:$0xff]  ;;  %v1117_v11 = vld [vmem:[#allocation8 + $0x178] sm:$0xff] }
 0x4fb   :  { %v1149_v12 = vld [vmem:[#allocation8 + $0x378] sm:$0xff] }
 0x4fe   :  { %v1917_v27 = vpop.permute.xlu1 %1916  ;;  %v1932_v31 = vpop.permute.xlu2 %1931 }
 0x4ff   :  { %v1919_v35 = vunpack.i.h.bf16 %v1917_v27  ;;  %v1918_v36 = vunpack.i.l.bf16 %v1917_v27  ;;  %v1934_v60 = vunpack.i.h.bf16 %v1932_v31  ;;  %v1933_v61 = vunpack.i.l.bf16 %v1932_v31 }
 0x501   :  { %v1199_v40 = vsel %vm142_vm1, %v1918_v36, %v1919_v35  ;;  %v1203_v41 = vsel %vm142_vm1, %v1919_v35, %v1918_v36  ;;  %v1198_v15 = vsel %vm142_vm1, %v1933_v61, %v1934_v60  ;;  %v1202_v16 = vsel %vm142_vm1, %v1934_v60, %v1933_v61 }
 0x506   :  { %v1922_v34 = vpop.permute.xlu0 %1921  ;;  %v1937_v42 = vpop.permute.xlu1 %1936 }
 0x507   :  { %v1924_v38 = vunpack.i.h.bf16 %v1922_v34  ;;  %v1923_v39 = vunpack.i.l.bf16 %v1922_v34  ;;  %v1942_v43 = vpop.permute.xlu2 %1941  ;;  %v1939_v47 = vunpack.i.h.bf16 %v1937_v42  ;;  %v1938_v50 = vunpack.i.l.bf16 %v1937_v42  ;;  %v1112_v42 = vld [vmem:[#allocation8 + $0x130] sm:$0xff] }
 0x508   :  { %v1944_v29 = vunpack.i.h.bf16 %v1942_v43  ;;  %v1943_v56 = vunpack.i.l.bf16 %v1942_v43  ;;  %v1145_v43 = vld [vmem:[#allocation8 + $0x338] sm:$0xff] }
 0x509   :  { %v1200_v37 = vsel %vm142_vm1, %v1923_v39, %v1924_v38  ;;  %v1204_v32 = vsel %vm142_vm1, %v1924_v38, %v1923_v39  ;;  %v1176_v45 = vsel %vm834_vm4, %v1938_v50, %v1939_v47  ;;  %v1180_v63 = vsel %vm834_vm4, %v1939_v47, %v1938_v50  ;;  %v1142_v47 = vld [vmem:[#allocation8 + $0x310] sm:$0xff]  ;;  %v1111_v50 = vld [vmem:[#allocation8 + $0x118] sm:$0xff] }
 0x50a   :  { %1223 = vmatpush.msra.mxu2 %v1200_v37  ;;  %1252 = vmatpush.msra.mxu3 %v1204_v32  ;;  %v1175_v3 = vsel %vm834_vm4, %v1943_v56, %v1944_v29  ;;  %v1179_v5 = vsel %vm834_vm4, %v1944_v29, %v1943_v56  ;;  %v1114_v37 = vld [vmem:[#allocation8 + $0x150] sm:$0xff]  ;;  %v1109_v56 = vld [vmem:[#allocation8 + $0xf8] sm:$0xff] }
 0x50b   :  { %v1146_v32 = vld [vmem:[#allocation8 + $0x350] sm:$0xff] }
 0x50c   :  { %1224 = vmatpush.msra.mxu2 %v1199_v40  ;;  %1253 = vmatpush.msra.mxu3 %v1203_v41  ;;  %v1115_v40 = vld [vmem:[#allocation8 + $0x158] sm:$0xff]  ;;  %v1140_v29 = vld [vmem:[#allocation8 + $0x2f0] sm:$0xff] }
 0x50d   :  { %v1147_v41 = vld [vmem:[#allocation8 + $0x358] sm:$0xff] }
 0x50e   :  { %v1947_v44 = vpop.permute.xlu0 %1946  ;;  %1225 = vmatpush.msra.mxu2 %v1198_v15  ;;  %1254 = vmatpush.msra.mxu3 %v1202_v16  ;;  %v1144_v15 = vld [vmem:[#allocation8 + $0x330] sm:$0xff]  ;;  %v1113_v16 = vld [vmem:[#allocation8 + $0x138] sm:$0xff] }
 0x50f   :  { %v1949_v53 = vunpack.i.h.bf16 %v1947_v44  ;;  %v1948_v28 = vunpack.i.l.bf16 %v1947_v44  ;;  %v1110_v44 = vld [vmem:[#allocation8 + $0x110] sm:$0xff] }
 0x511   :  { %v1177_v59 = vsel %vm834_vm4, %v1948_v28, %v1949_v53  ;;  %v1181_v62 = vsel %vm834_vm4, %v1949_v53, %v1948_v28  ;;  %v1143_v53 = vld [vmem:[#allocation8 + $0x318] sm:$0xff]  ;;  %v1108_v28 = vld [vmem:[#allocation8 + $0xf0] sm:$0xff] }
 0x512   :  { %1226 = vmatpush.msra.mxu2 %v1177_v59  ;;  %1255 = vmatpush.msra.mxu3 %v1181_v62  ;;  %v1141_v59 = vld [vmem:[#allocation8 + $0x2f8] sm:$0xff]  ;;  %v1106_v62 = vld [vmem:[#allocation8 + $0xd0] sm:$0xff] }
 0x514   :  { %1227 = vmatpush.msra.mxu2 %v1176_v45  ;;  %1256 = vmatpush.msra.mxu3 %v1180_v63  ;;  %v1138_v45 = vld [vmem:[#allocation8 + $0x2d0] sm:$0xff]  ;;  %v1107_v63 = vld [vmem:[#allocation8 + $0xd8] sm:$0xff] }
 0x516   :  { %v1952_v48 = vpop.permute.xlu0 %1951  ;;  %1228 = vmatpush.msra.mxu2 %v1175_v3  ;;  %1257 = vmatpush.msra.mxu3 %v1179_v5  ;;  %v1139_v3 = vld [vmem:[#allocation8 + $0x2d8] sm:$0xff]  ;;  %v1104_v5 = vld [vmem:[#allocation8 + $0xb0] sm:$0xff] }
 0x517   :  { %v1954_v46 = vunpack.i.h.bf16 %v1952_v48  ;;  %v1953_v30 = vunpack.i.l.bf16 %v1952_v48  ;;  %v1136_v48 = vld [vmem:[#allocation8 + $0x2b0] sm:$0xff] }
 0x519   :  { %v1174_v13 = vsel %vm834_vm4, %v1953_v30, %v1954_v46  ;;  %v1178_v14 = vsel %vm834_vm4, %v1954_v46, %v1953_v30  ;;  %v1105_v46 = vld [vmem:[#allocation8 + $0xb8] sm:$0xff] }
 0x51a   :  { %1229 = vmatpush.msra.mxu2 %v1174_v13  ;;  %1258 = vmatpush.msra.mxu3 %v1178_v14  ;;  %v1137_v30 = vld [vmem:[#allocation8 + $0x2b8] sm:$0xff]  ;;  %v1102_v13 = vld [vmem:[#allocation8 + $0x90] sm:$0xff] }
 0x51b   :  { %v1134_v14 = vld [vmem:[#allocation8 + $0x290] sm:$0xff] }
 0x51c   :  { %1230 = vmatpush.msra.mxu2 %v2677_v2  ;;  %1259 = vmatpush.msra.mxu3 %v2675_v9  ;;  %v1118_v9 = vld [vmem:[#allocation8 + $0x190] sm:$0xff] }
 0x51d   :  { %v1150_v2 = vld [vmem:[#allocation8 + $0x390] sm:$0xff] }
 0x51e   :  { %1231 = vmatpush.msra.mxu2 %v2669_v51  ;;  %1260 = vmatpush.msra.mxu3 %v2667_v24  ;;  %v1122_v24 = vld [vmem:[#allocation8 + $0x1d0] sm:$0xff]  ;;  %v1155_v51 = vld [vmem:[#allocation8 + $0x3d8] sm:$0xff] }
 0x51f   :  { %1340 = vmatpush.msrb.mxu1 %v1150_v2  ;;  %v1127_v2 = vld [vmem:[#allocation8 + $0x218] sm:$0xff] }
 0x520   :  { %1232 = vmatpush.msra.mxu2 %v2662_v20  ;;  %1261 = vmatpush.msra.mxu3 %v2660_v33  ;;  %v107_v33 = vld [vmem:[#allocation5 + $0x88] sm:$0xff]  ;;  %v1124_v20 = vld [vmem:[#allocation8 + $0x1f0] sm:$0xff] }
 0x521   :  { %1308 = vmatpush.msrb.mxu0 %v1124_v20  ;;  %1341 = vmatpush.msrb.mxu1 %v1148_v0  ;;  %v1101_v20 = vld [vmem:[#allocation8 + $0x78] sm:$0xff] }
 0x522   :  { %1233 = vmatpush.msra.mxu2 %v2683_v58  ;;  %1262 = vmatpush.msra.mxu3 %v2685_v4  ;;  %v1119_v4 = vld [vmem:[#allocation8 + $0x198] sm:$0xff] }
 0x523   :  { %1698 = vmatmul.msk.f32.vlgmr.msra.gmra.mxu2 %vm867_vm5, %v104_v17  ;;  %1702 = vmatmul.msk.f32.vlgmr.msra.gmra.mxu3 %vm867_vm5, %v104_v17  ;;  %v1103_v17 = vld [vmem:[#allocation8 + $0x98] sm:$0xff] }
 0x524   :  { %1366 = vmatpush.msrb.mxu2 %v1125_v49  ;;  %1395 = vmatpush.msrb.mxu3 %v1157_v23  ;;  %v1098_v49 = vld [vmem:[#allocation8 + $0x50] sm:$0xff] }
 0x525   :  { %1309 = vmatpush.msrb.mxu0 %v1122_v24  ;;  %1342 = vmatpush.msrb.mxu1 %v1146_v32  ;;  %v1130_v23 = vld [vmem:[#allocation8 + $0x250] sm:$0xff]  ;;  %v1099_v24 = vld [vmem:[#allocation8 + $0x58] sm:$0xff] }
 0x526   :  { %1367 = vmatpush.msrb.mxu2 %v1123_v26  ;;  %1396 = vmatpush.msrb.mxu3 %v1155_v51  ;;  %v1096_v26 = vld [vmem:[#allocation8 + $0x30] sm:$0xff] }
 0x527   :  { %1310 = vmatpush.msrb.mxu0 %v1120_v54  ;;  %1343 = vmatpush.msrb.mxu1 %v1144_v15  ;;  %v1128_v51 = vld [vmem:[#allocation8 + $0x230] sm:$0xff]  ;;  %v1097_v54 = vld [vmem:[#allocation8 + $0x38] sm:$0xff] }
 0x528   :  { %1368 = vmatpush.msrb.mxu2 %v1121_v55  ;;  %1397 = vmatpush.msrb.mxu3 %v1153_v1  ;;  %v1094_v55 = vld [vmem:[#allocation8 + $0x10] sm:$0xff] }
 0x529   :  { %1311 = vmatpush.msrb.mxu0 %v1118_v9  ;;  %1344 = vmatpush.msrb.mxu1 %v1142_v47  ;;  %v1126_v1 = vld [vmem:[#allocation8 + $0x210] sm:$0xff]  ;;  %v1095_v9 = vld [vmem:[#allocation8 + $0x18] sm:$0xff] }
 0x52a   :  { %1369 = vmatpush.msrb.mxu2 %v1119_v4  ;;  %1398 = vmatpush.msrb.mxu3 %v1151_v7 }
 0x52b   :  { %1699 = vmatmul.msk.f32.gmra.mxu2 %vm867_vm5, %v105_v21  ;;  %1703 = vmatmul.msk.f32.gmra.mxu3 %vm867_vm5, %v105_v21  ;;  %v1135_v21 = vld [vmem:[#allocation8 + $0x298] sm:$0xff] }
 0x52c   :  { %1312 = vmatpush.msrb.mxu0 %v1116_v8  ;;  %1370 = vmatpush.msrb.mxu2 %v1117_v11 }
 0x52d   :  { %1399 = vmatpush.msrb.mxu3 %v1149_v12  ;;  %1345 = vmatpush.msrb.mxu1 %v1140_v29 }
 0x52e   :  { %1313 = vmatpush.msrb.mxu0 %v1114_v37  ;;  %1371 = vmatpush.msrb.mxu2 %v1115_v40 }
 0x52f   :  { %1400 = vmatpush.msrb.mxu3 %v1147_v41  ;;  %1346 = vmatpush.msrb.mxu1 %v1138_v45 }
 0x530   :  { %1314 = vmatpush.msrb.mxu0 %v1112_v42  ;;  %1372 = vmatpush.msrb.mxu2 %v1113_v16 }
 0x531   :  { %1401 = vmatpush.msrb.mxu3 %v1145_v43  ;;  %1347 = vmatpush.msrb.mxu1 %v1136_v48 }
 0x532   :  { %1315 = vmatpush.msrb.mxu0 %v1110_v44  ;;  %1373 = vmatpush.msrb.mxu2 %v1111_v50 }
 0x533   :  { %1700 = vmatmul.msk.f32.gmra.mxu2 %vm867_vm5, %v106_v22  ;;  %1704 = vmatmul.msk.f32.gmra.mxu3 %vm867_vm5, %v106_v22  ;;  %v1100_v22 = vld [vmem:[#allocation8 + $0x70] sm:$0xff] }
 0x534   :  { %1402 = vmatpush.msrb.mxu3 %v1143_v53  ;;  %1316 = vmatpush.msrb.mxu0 %v1108_v28 }
 0x535   :  { %1374 = vmatpush.msrb.mxu2 %v1109_v56  ;;  %1348 = vmatpush.msrb.mxu1 %v1134_v14 }
 0x536   :  { %1403 = vmatpush.msrb.mxu3 %v1141_v59  ;;  %1317 = vmatpush.msrb.mxu0 %v1106_v62 }
 0x537   :  { %1375 = vmatpush.msrb.mxu2 %v1107_v63 }
 0x538   :  { %1404 = vmatpush.msrb.mxu3 %v1139_v3  ;;  %1318 = vmatpush.msrb.mxu0 %v1104_v5 }
 0x539   :  { %1376 = vmatpush.msrb.mxu2 %v1105_v46 }
 0x53a   :  { %1405 = vmatpush.msrb.mxu3 %v1137_v30  ;;  %1319 = vmatpush.msrb.mxu0 %v1102_v13 }
 0x53b   :  { %1701 = vmatmul.msk.f32.gmra.mxu2 %vm867_vm5, %v107_v33  ;;  %1705 = vmatmul.msk.f32.gmra.mxu3 %vm867_vm5, %v107_v33  ;;  %v1132_v33 = vld [vmem:[#allocation8 + $0x270] sm:$0xff] }
 0x53c   :  { %1377 = vmatpush.msrb.mxu2 %v1103_v17  ;;  %1406 = vmatpush.msrb.mxu3 %v1135_v21 }
 0x53d   :  { %1320 = vmatpush.msrb.mxu0 %v1100_v22  ;;  %1349 = vmatpush.msrb.mxu1 %v1132_v33 }
 0x53e   :  { %1378 = vmatpush.msrb.mxu2 %v1101_v20  ;;  %1407 = vmatpush.msrb.mxu3 %v1133_v10 }
 0x53f   :  { %1321 = vmatpush.msrb.mxu0 %v1098_v49  ;;  %1350 = vmatpush.msrb.mxu1 %v1130_v23 }
 0x540   :  { %1379 = vmatpush.msrb.mxu2 %v1099_v24  ;;  %1408 = vmatpush.msrb.mxu3 %v1131_v25 }
 0x541   :  { %1322 = vmatpush.msrb.mxu0 %v1096_v26  ;;  %1351 = vmatpush.msrb.mxu1 %v1128_v51 }
 0x542   :  { %1380 = vmatpush.msrb.mxu2 %v1097_v54  ;;  %1409 = vmatpush.msrb.mxu3 %v1129_v52 }
 0x543   :  { %1323 = vmatpush.msrb.mxu0 %v1094_v55  ;;  %1352 = vmatpush.msrb.mxu1 %v1126_v1 }
 0x544   :  { %1381 = vmatpush.msrb.mxu2 %v1095_v9  ;;  %1410 = vmatpush.msrb.mxu3 %v1127_v2 }
 0x5a6   :  { %v2740_v57 = vpop.f32.mrf.mxu2  ;;  %v2742_v58 = vpop.f32.mrf.mxu3 }
 0x5a7   :  { %v1955_v6 = vpack.i.bf16 %v2742_v58, %v2740_v57 }
 0x5a9   :  { %1956 = vrot.lane.b32.xlu1 %v1955_v6, %s2228_s18 }
 0x5ae   :  { %v2747_v27 = vpop.f32.mrf.mxu2  ;;  %v2749_v31 = vpop.f32.mrf.mxu3 }
 0x5af   :  { %v1960_v34 = vpack.i.bf16 %v2749_v31, %v2747_v27 }
 0x5b1   :  { %1961 = vrot.lane.b32.xlu2 %v1960_v34, %s2228_s18 }
 0x5b6   :  { %v2754_v35 = vpop.f32.mrf.mxu2  ;;  %v2756_v36 = vpop.f32.mrf.mxu3 }
 0x5b7   :  { %v1965_v38 = vpack.i.bf16 %v2756_v36, %v2754_v35 }
 0x5b9   :  { %1966 = vrot.lane.b32.xlu0 %v1965_v38, %s2228_s18 }
 0x5be   :  { %v2761_v39 = vpop.f32.mrf.mxu2  ;;  %v2763_v60 = vpop.f32.mrf.mxu3 }
 0x5bf   :  { %v1970_v61 = vpack.i.bf16 %v2763_v60, %v2761_v39 }
 0x5c1   :  { %1971 = vrot.lane.b32.xlu1 %v1970_v61, %s2228_s18 }
 0x60b   :  { %v1962_v8 = vpop.permute.xlu2 %1961 }
 0x60c   :  { %v1964_v38 = vunpack.i.h.bf16 %v1962_v8  ;;  %v1963_v61 = vunpack.i.l.bf16 %v1962_v8 }
 0x60e   :  { %v1293_v37 = vsel %vm834_vm4, %v1963_v61, %v1964_v38  ;;  %v1297_v32 = vsel %vm834_vm4, %v1964_v38, %v1963_v61 }
 0x60f   :  { %v1302_v40 = vmax.f32 %v2747_v27, %v1293_v37  ;;  %v1303_v41 = vmax.f32 %v2749_v31, %v1297_v32 }
 0x61b   :  { %v1957_v4 = vpop.permute.xlu1 %1956 }
 0x61c   :  { %v1959_v6 = vunpack.i.h.bf16 %v1957_v4  ;;  %v1958_v7 = vunpack.i.l.bf16 %v1957_v4 }
 0x61e   :  { %v1292_v0 = vsel %vm834_vm4, %v1958_v7, %v1959_v6  ;;  %v1296_v11 = vsel %vm834_vm4, %v1959_v6, %v1958_v7 }
 0x61f   :  { %v1300_v12 = vmax.f32 %v2740_v57, %v1292_v0  ;;  %v1301_v34 = vmax.f32 %v2742_v58, %v1296_v11 }
 0x621   :  { %1324 = vmatmul.f32.vlgmr.msrb.gmra.mxu0 %v1300_v12  ;;  %1353 = vmatmul.f32.vlgmr.msrb.gmra.mxu1 %v1301_v34 }
 0x622   :  { %1382 = vmatmul.f32.vlgmr.msrb.gmra.mxu2 %v1300_v12  ;;  %1411 = vmatmul.f32.vlgmr.msrb.gmra.mxu3 %v1301_v34 }
 0x629   :  { %1327 = vmatmul.f32.gmra.mxu0 %v1302_v40  ;;  %1356 = vmatmul.f32.gmra.mxu1 %v1303_v41 }
 0x62a   :  { %1385 = vmatmul.f32.gmra.mxu2 %v1302_v40  ;;  %1414 = vmatmul.f32.gmra.mxu3 %v1303_v41 }
 0x62b   :  { %v1967_v57 = vpop.permute.xlu0 %1966 }
 0x62c   :  { %v1969_v58 = vunpack.i.h.bf16 %v1967_v57  ;;  %v1968_v42 = vunpack.i.l.bf16 %v1967_v57 }
 0x62e   :  { %v1294_v15 = vsel %vm834_vm4, %v1968_v42, %v1969_v58  ;;  %v1298_v16 = vsel %vm834_vm4, %v1969_v58, %v1968_v42 }
 0x62f   :  { %v1304_v43 = vmax.f32 %v2754_v35, %v1294_v15  ;;  %v1305_v44 = vmax.f32 %v2756_v36, %v1298_v16 }
 0x631   :  { %1330 = vmatmul.f32.gmra.mxu0 %v1304_v43  ;;  %1359 = vmatmul.f32.gmra.mxu1 %v1305_v44 }
 0x632   :  { %1388 = vmatmul.f32.gmra.mxu2 %v1304_v43  ;;  %1417 = vmatmul.f32.gmra.mxu3 %v1305_v44 }
 0x633   :  { %v1972_v27 = vpop.permute.xlu1 %1971 }
 0x634   :  { %v1974_v31 = vunpack.i.h.bf16 %v1972_v27  ;;  %v1973_v47 = vunpack.i.l.bf16 %v1972_v27 }
 0x636   :  { %v1295_v50 = vsel %vm834_vm4, %v1973_v47, %v1974_v31  ;;  %v1299_v53 = vsel %vm834_vm4, %v1974_v31, %v1973_v47 }
 0x637   :  { %v1306_v28 = vmax.f32 %v2761_v39, %v1295_v50  ;;  %v1307_v29 = vmax.f32 %v2763_v60, %v1299_v53 }
 0x639   :  { %1333 = vmatmul.f32.gmra.mxu0 %v1306_v28  ;;  %1362 = vmatmul.f32.gmra.mxu1 %v1307_v29 }
 0x63a   :  { %1391 = vmatmul.f32.gmra.mxu2 %v1306_v28  ;;  %1420 = vmatmul.f32.gmra.mxu3 %v1307_v29 }
 0x69e   :  { %v1325_v35 = vpop.f32.mrf.mxu0  ;;  %v1354_v36 = vpop.f32.mrf.mxu1 }
 0x69f   :  { %v1355_v52 = vadd.f32 %v1354_v36, %v1325_v35 }
 0x6a5   :  { %v1383_v56 = vpop.f32.mrf.mxu2  ;;  %v1412_v59 = vpop.f32.mrf.mxu3 }
 0x6a6   :  { %v1328_v62 = vpop.f32.mrf.mxu0  ;;  %v1357_v45 = vpop.f32.mrf.mxu1  ;;  %v1413_v54 = vadd.f32 %v1412_v59, %v1383_v56 }
 0x6a7   :  { %v1358_v63 = vadd.f32 %v1357_v45, %v1328_v62 }
 0x6a9   :  { %2047 = vtanh.f32 %v1358_v63 }
 0x6ad   :  { %v1386_v3 = vpop.f32.mrf.mxu2  ;;  %v1415_v5 = vpop.f32.mrf.mxu3 }
 0x6ae   :  { %v1416_v48 = vadd.f32 %v1415_v5, %v1386_v3  ;;  %v1331_v46 = vpop.f32.mrf.mxu0  ;;  %v1360_v30 = vpop.f32.mrf.mxu1 }
 0x6af   :  { %v1361_v39 = vadd.f32 %v1360_v30, %v1331_v46  ;;  %v2792_v60 = vpop.eup %2047 }
 0x6b0   :  { %2049 = vtanh.f32 %v1416_v48 }
 0x6b1   :  { %2051 = vtanh.f32 %v1361_v39 }
 0x6b5   :  { %v1389_v13 = vpop.f32.mrf.mxu2  ;;  %v1418_v14 = vpop.f32.mrf.mxu3 }
 0x6b6   :  { %v2794_v17 = vpop.eup %2049  ;;  %v1419_v21 = vadd.f32 %v1418_v14, %v1389_v13  ;;  %v1334_v33 = vpop.f32.mrf.mxu0  ;;  %v110_v14 = vld [vmem:[#allocation5 + $0x68] sm:$0xff] }
 0x6b7   :  { %v1975_v22 = vpack.i.bf16 %v2794_v17, %v2792_v60  ;;  %v1363_v20 = vpop.f32.mrf.mxu1  ;;  %v2799_v49 = vpop.eup %2051 }
 0x6b8   :  { %2053 = vtanh.f32 %v1419_v21  ;;  %v1364_v10 = vadd.f32 %v1363_v20, %v1334_v33  ;;  %v1480_v21 = vld [vmem:[%s2891_s4] sm:$0x3]  ;;  %s2229_s4 = smov [#allocation10]  }
 0x6b9   :  { %1976 = vrot.lane.b32.xlu1 %v1975_v22, %s2226_s3  ;;  %v1482_v33 = vperm.slane %v1480_v21, 0  ;;  %s1660_s21 = sshll.u32 %s2229_s4, 4  ;;  %s1661_s21 = int_to_ptr.vmem [resolvable:$true] %s1660_s21 }
 0x6ba   :  { %2055 = vtanh.f32 %v1364_v10 }
 0x6bd   :  { %v1392_v23 = vpop.f32.mrf.mxu2  ;;  %v1421_v24 = vpop.f32.mrf.mxu3 }
 0x6be   :  { %v2801_v25 = vpop.eup %2053  ;;  %v1422_v26 = vadd.f32 %v1421_v24, %v1392_v23 }
 0x6bf   :  { %v1995_v51 = vpack.i.bf16 %v2801_v25, %v2799_v49 }
 0x6c0   :  { %2057 = vtanh.f32 %v1422_v26  ;;  %v2807_v55 = vpop.eup %2055 }
 0x6c1   :  { %1996 = vrot.lane.b32.xlu1 %v1995_v51, %s2228_s18  ;;  %1981 = vrot.lane.b32.xlu0 %v1995_v51, %s2226_s3  ;;  %2059 = vtanh.f32 %v1413_v54 }
 0x6c2   :  { %2061 = vtanh.f32 %v1355_v52 }
 0x6c6   :  { %v2809_v1 = vpop.eup %2057 }
 0x6c7   :  { %v2005_v9 = vpack.i.bf16 %v2809_v1, %v2807_v55  ;;  %v2815_v2 = vpop.eup %2059 }
 0x6c8   :  { %v2817_v4 = vpop.eup %2061 }
 0x6c9   :  { %2006 = vrot.lane.b32.xlu0 %v2005_v9, %s2228_s18  ;;  %1986 = vrot.lane.b32.xlu2 %v2005_v9, %s2226_s3  ;;  %v2010_v6 = vpack.i.bf16 %v2815_v2, %v2817_v4 }
 0x6d1   :  { %2011 = vrot.lane.b32.xlu0 %v2010_v6, %s2228_s18  ;;  %1991 = vrot.lane.b32.xlu2 %v2010_v6, %s2226_s3 }
 0x6d9   :  { %2001 = vrot.lane.b32.xlu2 %v1975_v22, %s2228_s18  ;;  %v1483_v22 = vperm.slane %v1480_v21, 1 }
 0x723   :  { %v1987_v7 = vpop.permute.xlu2 %1986 }
 0x724   :  { %v1989_v8 = vunpack.i.h.bf16 %v1987_v7  ;;  %v1988_v0 = vunpack.i.l.bf16 %v1987_v7 }
 0x726   :  { %v1475_v11 = vsel %vm142_vm1, %v1988_v0, %v1989_v8  ;;  %v1479_v12 = vsel %vm142_vm1, %v1989_v8, %v1988_v0 }
 0x727   :  { %1502 = vmatpush.msra.mxu0 %v1475_v11  ;;  %1716 = vmatpush.msra.mxu2 %v1475_v11 }
 0x728   :  { %1531 = vmatpush.msra.mxu1 %v1479_v12  ;;  %1728 = vmatpush.msra.mxu3 %v1479_v12 }
 0x72b   :  { %v1977_v34 = vpop.permute.xlu1 %1976  ;;  %v1992_v38 = vpop.permute.xlu2 %1991 }
 0x72c   :  { %v1979_v37 = vunpack.i.h.bf16 %v1977_v34  ;;  %v1978_v32 = vunpack.i.l.bf16 %v1977_v34  ;;  %v1994_v57 = vunpack.i.h.bf16 %v1992_v38  ;;  %v1993_v58 = vunpack.i.l.bf16 %v1992_v38  ;;  %v112_v34 = vld [vmem:[#allocation5 + $0x20] sm:$0xff]  ;;  %v113_v38 = vld [vmem:[#allocation5 + $0x48] sm:$0xff] }
 0x72e   :  { %v1473_v16 = vsel %vm142_vm1, %v1978_v32, %v1979_v37  ;;  %v1477_v44 = vsel %vm142_vm1, %v1979_v37, %v1978_v32  ;;  %v1472_v27 = vsel %vm142_vm1, %v1993_v58, %v1994_v57  ;;  %v1476_v50 = vsel %vm142_vm1, %v1994_v57, %v1993_v58  ;;  %v114_v32 = vld [vmem:[#allocation5 + $0x70] sm:$0xff] }
 0x733   :  { %v1982_v61 = vpop.permute.xlu0 %1981  ;;  %v1997_v43 = vpop.permute.xlu1 %1996 }
 0x734   :  { %v1984_v40 = vunpack.i.h.bf16 %v1982_v61  ;;  %v1983_v41 = vunpack.i.l.bf16 %v1982_v61  ;;  %v2002_v31 = vpop.permute.xlu2 %2001  ;;  %v1999_v53 = vunpack.i.h.bf16 %v1997_v43  ;;  %v1998_v28 = vunpack.i.l.bf16 %v1997_v43 }
 0x735   :  { %v2004_v36 = vunpack.i.h.bf16 %v2002_v31  ;;  %v2003_v56 = vunpack.i.l.bf16 %v2002_v31 }
 0x736   :  { %v1474_v42 = vsel %vm142_vm1, %v1983_v41, %v1984_v40  ;;  %v1478_v15 = vsel %vm142_vm1, %v1984_v40, %v1983_v41  ;;  %v1450_v45 = vsel %vm834_vm4, %v1998_v28, %v1999_v53  ;;  %v1454_v63 = vsel %vm834_vm4, %v1999_v53, %v1998_v28 }
 0x737   :  { %1503 = vmatpush.msra.mxu0 %v1474_v42  ;;  %1717 = vmatpush.msra.mxu2 %v1474_v42  ;;  %v1449_v3 = vsel %vm834_vm4, %v2003_v56, %v2004_v36  ;;  %v1453_v48 = vsel %vm834_vm4, %v2004_v36, %v2003_v56 }
 0x738   :  { %1532 = vmatpush.msra.mxu1 %v1478_v15  ;;  %1729 = vmatpush.msra.mxu3 %v1478_v15 }
 0x739   :  { %1504 = vmatpush.msra.mxu0 %v1473_v16  ;;  %1718 = vmatpush.msra.mxu2 %v1473_v16  ;;  %v115_v16 = vld [vmem:[#allocation5 + $0x98] sm:$0xff] }
 0x73a   :  { %1533 = vmatpush.msra.mxu1 %v1477_v44  ;;  %1730 = vmatpush.msra.mxu3 %v1477_v44 }
 0x73b   :  { %v2007_v47 = vpop.permute.xlu0 %2006  ;;  %1505 = vmatpush.msra.mxu0 %v1472_v27  ;;  %1719 = vmatpush.msra.mxu2 %v1472_v27 }
 0x73c   :  { %v2009_v29 = vunpack.i.h.bf16 %v2007_v47  ;;  %v2008_v35 = vunpack.i.l.bf16 %v2007_v47  ;;  %1534 = vmatpush.msra.mxu1 %v1476_v50  ;;  %1731 = vmatpush.msra.mxu3 %v1476_v50 }
 0x73e   :  { %v1451_v59 = vsel %vm834_vm4, %v2008_v35, %v2009_v29  ;;  %v1455_v62 = vsel %vm834_vm4, %v2009_v29, %v2008_v35 }
 0x73f   :  { %1506 = vmatpush.msra.mxu0 %v1451_v59  ;;  %1720 = vmatpush.msra.mxu2 %v1451_v59 }
 0x740   :  { %1535 = vmatpush.msra.mxu1 %v1455_v62  ;;  %1732 = vmatpush.msra.mxu3 %v1455_v62 }
 0x741   :  { %1507 = vmatpush.msra.mxu0 %v1450_v45  ;;  %1721 = vmatpush.msra.mxu2 %v1450_v45 }
 0x742   :  { %1536 = vmatpush.msra.mxu1 %v1454_v63  ;;  %1733 = vmatpush.msra.mxu3 %v1454_v63 }
 0x743   :  { %v2012_v5 = vpop.permute.xlu0 %2011  ;;  %1508 = vmatpush.msra.mxu0 %v1449_v3  ;;  %1722 = vmatpush.msra.mxu2 %v1449_v3 }
 0x744   :  { %v2014_v46 = vunpack.i.h.bf16 %v2012_v5  ;;  %v2013_v30 = vunpack.i.l.bf16 %v2012_v5  ;;  %1537 = vmatpush.msra.mxu1 %v1453_v48  ;;  %1734 = vmatpush.msra.mxu3 %v1453_v48 }
 0x746   :  { %v1448_v39 = vsel %vm834_vm4, %v2013_v30, %v2014_v46  ;;  %v1452_v13 = vsel %vm834_vm4, %v2014_v46, %v2013_v30 }
 0x747   :  { %1509 = vmatpush.msra.mxu0 %v1448_v39  ;;  %1723 = vmatpush.msra.mxu2 %v1448_v39 }
 0x748   :  { %1538 = vmatpush.msra.mxu1 %v1452_v13  ;;  %1735 = vmatpush.msra.mxu3 %v1452_v13 }
 0x749   :  { %1510 = vmatpush.msra.mxu0 %v2807_v55  ;;  %1724 = vmatpush.msra.mxu2 %v2807_v55 }
 0x74a   :  { %1539 = vmatpush.msra.mxu1 %v2809_v1  ;;  %1736 = vmatpush.msra.mxu3 %v2809_v1 }
 0x74b   :  { %1511 = vmatpush.msra.mxu0 %v2799_v49  ;;  %1725 = vmatpush.msra.mxu2 %v2799_v49 }
 0x74c   :  { %1540 = vmatpush.msra.mxu1 %v2801_v25  ;;  %1737 = vmatpush.msra.mxu3 %v2801_v25 }
 0x74d   :  { %1512 = vmatpush.msra.mxu0 %v2792_v60  ;;  %1726 = vmatpush.msra.mxu2 %v2792_v60  ;;  %v109_v60 = vld [vmem:[#allocation5 + $0x40] sm:$0xff] }
 0x74e   :  { %1541 = vmatpush.msra.mxu1 %v2794_v17  ;;  %1738 = vmatpush.msra.mxu3 %v2794_v17  ;;  %v111_v17 = vld [vmem:[#allocation5 + $0x90] sm:$0xff] }
 0x74f   :  { %1513 = vmatpush.msra.mxu0 %v2817_v4  ;;  %1727 = vmatpush.msra.mxu2 %v2817_v4 }
 0x750   :  { %1542 = vmatpush.msra.mxu1 %v2815_v2  ;;  %1739 = vmatpush.msra.mxu3 %v2815_v2 }
 0x751   :  { %1710 = vmatmul.msk.f32.vlgmr.msra.gmra.mxu1 %vm867_vm5, %v108_v19  ;;  %1712 = vmatmul.msk.f32.vlgmr.msra.gmra.mxu3 %vm867_vm5, %v110_v14 }
 0x752   :  { %1706 = vmatmul.msk.f32.vlgmr.msra.gmra.mxu0 %vm867_vm5, %v108_v19  ;;  %1708 = vmatmul.msk.f32.vlgmr.msra.gmra.mxu2 %vm867_vm5, %v110_v14 }
 0x759   :  { %1711 = vmatmul.msk.f32.gmra.mxu1 %vm867_vm5, %v109_v60  ;;  %1713 = vmatmul.msk.f32.gmra.mxu3 %vm867_vm5, %v111_v17 }
 0x75a   :  { %1707 = vmatmul.msk.f32.gmra.mxu0 %vm867_vm5, %v109_v60  ;;  %1709 = vmatmul.msk.f32.gmra.mxu2 %vm867_vm5, %v111_v17 }
 0x7ce   :  { %v1544_v20 = vpop.f32.mrf.mxu1 }
 0x7cf   :  { %v1545_v10 = vadd.f32 %v1544_v20, %v1483_v22  ;;  %v1515_v49 = vpop.f32.mrf.mxu0 }
 0x7d0   :  { %v1516_v23 = vadd.f32 %v1515_v49, %v1482_v33 }
 0x7d1   :  { %1600 = vmax.xlane.f32.xlu1 %v1545_v10 }
 0x7d2   :  { %1556 = vmax.xlane.f32.xlu0 %v1516_v23 }
 0x7d4   :  { %v1550_v24 = vpop.f32.mrf.mxu3 }
 0x7d5   :  { %v1551_v25 = vadd.f32 %v1550_v24, %v1483_v22  ;;  %v1521_v26 = vpop.f32.mrf.mxu2 }
 0x7d6   :  { %v1547_v51 = vpop.f32.mrf.mxu1  ;;  %v1522_v6 = vadd.f32 %v1521_v26, %v1482_v33 }
 0x7d7   :  { %v1548_v54 = vadd.f32 %v1547_v51, %v1483_v22  ;;  %v1518_v52 = vpop.f32.mrf.mxu0 }
 0x7d8   :  { %v1519_v9 = vadd.f32 %v1518_v52, %v1482_v33 }
 0x7d9   :  { %1602 = vmax.xlane.f32.xlu2 %v1548_v54  ;;  %1604 = vmax.xlane.f32.xlu1 %v1551_v25 }
 0x7dc   :  { %v1553_v55 = vpop.f32.mrf.mxu3 }
 0x7dd   :  { %v1554_v1 = vadd.f32 %v1553_v55, %v1483_v22  ;;  %v1524_v2 = vpop.f32.mrf.mxu2 }
 0x7de   :  { %v1525_v4 = vadd.f32 %v1524_v2, %v1482_v33 }
 0x7df   :  { %1606 = vmax.xlane.f32.xlu0 %v1554_v1 }
 0x7e1   :  { %1558 = vmax.xlane.f32.xlu2 %v1519_v9  ;;  %1562 = vmax.xlane.f32.xlu1 %v1525_v4 }
 0x7e9   :  { %1560 = vmax.xlane.f32.xlu2 %v1522_v6 }
 0x844   :  { %v1601_v7 = vpop.xlane.xlu1 %1600 }
 0x845   :  { %v1557_v8 = vpop.xlane.xlu0 %1556  ;;  %2063 = vtanh.f32 %v1601_v7 }
 0x84b   :  { %v2064_v12 = vpop.eup %2063 }
 0x84c   :  { %v1603_v0 = vpop.xlane.xlu2 %1602  ;;  %v1605_v11 = vpop.xlane.xlu1 %1604  ;;  %v1612_v41 = vmul.f32 %v2064_v12, %v112_v34 }
 0x84d   :  { %2065 = vtanh.f32 %v1603_v0 }
 0x84e   :  { %2067 = vtanh.f32 %v1605_v11 }
 0x852   :  { %v1607_v61 = vpop.xlane.xlu0 %1606 }
 0x853   :  { %v2066_v37 = vpop.eup %2065  ;;  %2069 = vtanh.f32 %v1607_v61 }
 0x854   :  { %v2068_v40 = vpop.eup %2067  ;;  %v1613_v57 = vmul.f32 %v2066_v37, %v113_v38  ;;  %v1559_v58 = vpop.xlane.xlu2 %1558 }
 0x855   :  { %v1614_v15 = vmul.f32 %v2068_v40, %v114_v32  ;;  %2071 = vtanh.f32 %v1559_v58  ;;  %v1563_v43 = vpop.xlane.xlu1 %1562 }
 0x856   :  { %v1616_v42 = vadd.f32 %v1613_v57, %v1612_v41  ;;  %2073 = vtanh.f32 %v1557_v8 }
 0x857   :  { %2075 = vtanh.f32 %v1563_v43 }
 0x858   :  { %v1617_v27 = vadd.f32 %v1616_v42, %v1614_v15 }
 0x859   :  { %v2070_v44 = vpop.eup %2069 }
 0x85a   :  { %v1615_v31 = vmul.f32 %v2070_v44, %v115_v16 }
 0x85b   :  { %v2072_v53 = vpop.eup %2071 }
 0x85c   :  { %v1618_v47 = vadd.f32 %v1617_v27, %v1615_v31  ;;  %v1561_v50 = vpop.xlane.xlu2 %1560  ;;  %v2074_v29 = vpop.eup %2073  ;;  %v1569_v36 = vmul.f32 %v2072_v53, %v113_v38 }
 0x85d   :  { %2077 = vtanh.f32 %v1561_v50  ;;  %v2076_v56 = vpop.eup %2075  ;;  %v1568_v59 = vmul.f32 %v2074_v29, %v112_v34 }
 0x85e   :  { %v1619_v28 = vrot.slane %v1618_v47, 4  ;;  %v1571_v48 = vmul.f32 %v2076_v56, %v115_v16 }
 0x85f   :  { %v1572_v3 = vadd.f32 %v1569_v36, %v1568_v59 }
 0x860   :  { %v1620_v35 = vadd.f32 %v1619_v28, %v1618_v47 }
 0x862   :  { %v1621_v62 = vrot.slane %v1620_v35, 2 }
 0x863   :  { %v2078_v45 = vpop.eup %2077 }
 0x864   :  { %v1622_v63 = vadd.f32 %v1621_v62, %v1620_v35  ;;  %v1570_v5 = vmul.f32 %v2078_v45, %v114_v32 }
 0x866   :  { %v1623_v46 = vrot.slane %v1622_v63, 1  ;;  %v1573_v30 = vadd.f32 %v1572_v3, %v1570_v5 }
 0x868   :  { %v1624_v39 = vadd.f32 %v1623_v46, %v1622_v63  ;;  %v1574_v13 = vadd.f32 %v1573_v30, %v1571_v48 }
 0x86a   :  { %v1715_v19 = vmul.f32 -1.442695, %v1624_v39  ;;  %v1575_v14 = vrot.slane %v1574_v13, 4 }
 0x86c   :  { %2079 = vpow2.f32 %v1715_v19  ;;  %v1576_v60 = vadd.f32 %v1575_v14, %v1574_v13 }
 0x86e   :  { %v1577_v17 = vrot.slane %v1576_v60, 2 }
 0x870   :  { %v1578_v21 = vadd.f32 %v1577_v17, %v1576_v60 }
 0x872   :  { %v2080_v22 = vpop.eup %2079  ;;  %v1579_v33 = vrot.slane %v1578_v21, 1 }
 0x873   :  { %v1628_v20 = vadd.f32 1.0, %v2080_v22 }
 0x874   :  { %v1580_v10 = vadd.f32 %v1579_v33, %v1578_v21 }
 0x875   :  { %2081 = vrcp.f32 %v1628_v20  ;;  %v1640_v1 = vand.u32 2147483648, %v1628_v20  ;;  %vm1634_vm7 = vweird.f32 %v1628_v20  ;;  %v1638_v2 = vand.u32 2147483647, %v1628_v20 }
 0x876   :  { %v1714_v49 = vmul.f32 -1.442695, %v1580_v10 }
 0x877   :  { %v1641_v8 = vor.u32 1.1754944e-38, %v1640_v1  ;;  %vm1639_vm10 = vcmp.eq.f32.partialorder %v1638_v2, 8.507059e+37 }
 0x878   :  { %2083 = vpow2.f32 %v1714_v49 }
 0x87b   :  { %v2082_v23 = vpop.eup %2081 }
 0x87c   :  { %v1630_v24 = vmul.f32 %v2082_v23, %v1628_v20  ;;  %vm1635_vm6 = vweird.f32 %v2082_v23 }
 0x87d   :  { %vm1636_vm8 = vmor %vm1634_vm7, %vm1635_vm6 }
 0x87e   :  { %v2084_v25 = vpop.eup %2083  ;;  %v1631_v26 = vsub.f32 1.0, %v1630_v24 }
 0x87f   :  { %v1584_v51 = vadd.f32 1.0, %v2084_v25 }
 0x880   :  { %v1632_v54 = vmul.f32 %v2082_v23, %v1631_v26 }
 0x881   :  { %2085 = vrcp.f32 %v1584_v51  ;;  %v1596_v7 = vand.u32 2147483648, %v1584_v51  ;;  %v1594_v11 = vand.u32 2147483647, %v1584_v51  ;;  %vm1590_vm11 = vweird.f32 %v1584_v51 }
 0x882   :  { %v1633_v52 = vadd.f32 %v2082_v23, %v1632_v54 }
 0x883   :  { %v1597_v38 = vor.u32 1.1754944e-38, %v1596_v7  ;;  %vm1595_vm14 = vcmp.eq.f32.partialorder %v1594_v11, 8.507059e+37 }
 0x884   :  { %v1637_v6 = vsel %vm1636_vm8, %v2082_v23, %v1633_v52 }
 0x885   :  { %v1642_v12 = vsel %vm1639_vm10, %v1641_v8, %v1637_v6 }
 0x886   :  { %v1646_v37 = vrot.slane %v1642_v12, 7 }
 0x887   :  { %v2086_v55 = vpop.eup %2085 }
 0x888   :  { %v1586_v9 = vmul.f32 %v2086_v55, %v1584_v51  ;;  %vm1591_vm9 = vweird.f32 %v2086_v55 }
 0x889   :  { %vm1592_vm12 = vmor %vm1590_vm11, %vm1591_vm9 }
 0x88a   :  { %v1587_v4 = vsub.f32 1.0, %v1586_v9 }
 0x88c   :  { %v1588_v0 = vmul.f32 %v2086_v55, %v1587_v4 }
 0x88e   :  { %v1589_v34 = vadd.f32 %v2086_v55, %v1588_v0 }
 0x890   :  { %v1593_v61 = vsel %vm1592_vm12, %v2086_v55, %v1589_v34 }
 0x891   :  { %v1598_v32 = vsel %vm1595_vm14, %v1597_v38, %v1593_v61 }
 0x892   :  { %v1648_v40 = vsel %vm1647_vm13, %v1598_v32, %v1646_v37 }
 0x893   :  { %1654 = vst.msk [vmem:[#allocation10] sm:$0x3] %vm1652_vm15, %v1648_v40 }
 0x894   :  { %1665 = dma.vmem_to_hbm [thread:$0]  %s1661_s21, 32, %s1663_s24, [#allocation4]  }
 0x895   :  { %2213 = dma.done.wait [#allocation4], 32  }
 0x896   :  { %2214 = vsyncadd [#allocation4], 4294967264 }
 0x897   :  { %1670 = vsyncpa [#allocation3], 1 }
 0x898   :  { %1671 = vsyncpa [#allocation6], 1 }
 0x899   :  { %1672 = vsyncpa [#allocation9], 1 }
 0x89a   :  { %1673 = vsyncpa [#allocation4], 1 }

</bundles_post_ra>
